<compile_context>
chip_gen: v6e
topology: v6e:2x2x1
jax: 0.10.0
libtpu: 0.0.40
codegen_flags: <defaults>
</compile_context>

<pallas_src>
import jax
import jax.numpy as jnp
from jax.experimental import pallas as pl
from jax.experimental.pallas import tpu as pltpu

EPS = 1e-5


def _packed_complex_layernorm(v, n_complex, half):
    """Naive complex LayerNorm on a lane-packed [re|im] array v of shape (rows, 2*half)."""
    inv_n = 1.0 / n_complex
    col = jnp.sum(v, axis=0, keepdims=True)                          # (1, 2*half) sublane reduce
    m_re = jnp.sum(col[:, :half], axis=1, keepdims=True) * inv_n     # (1, 1)
    m_im = jnp.sum(col[:, half:], axis=1, keepdims=True) * inv_n     # (1, 1)
    lane = jax.lax.broadcasted_iota(jnp.int32, (1, 2 * half), 1)
    mean = jnp.where(lane < half, m_re, m_im)                        # (1, 2*half) packed mean
    c = v - mean                                                     # two-pass: center first
    var = jnp.sum(c * c, keepdims=True) * inv_n                      # E[|x - m|^2], (1, 1)
    return c * jax.lax.rsqrt(var + EPS)


def patch_embed_kernel(x_ref, w1a_ref, w1b_ref, b1_ref, wc_ref, bc_ref,
                       w2a_ref, w2b_ref, bpe_ref, o_ref):
    D = x_ref.shape[-1] // 2          # flattened patch dim (cin * p * p)
    Hh = o_ref.shape[-2] // 2         # hidden dim (output block is (1, 2*hidden, P))

    x = x_ref[0]                      # (P, 2D) f32, [re | im] lane-packed
    P = x.shape[0]

    # ---- LayerNorm over [cin, H, W] ----
    n1 = _packed_complex_layernorm(x, P * D, D)
    # complex affine in packed form: [nr|ni]*[w1r|w1r] + [ni|nr]*[-w1i|w1i] + [b1r|b1i]
    a = n1 * w1a_ref[...] + pltpu.roll(n1, D, 1) * w1b_ref[...] + b1_ref[...]

    # ---- Conv2d(kernel=stride=patch) as ONE fused complex matmul on the MXU ----
    # [ar|ai] @ [[Wr, Wi], [-Wi, Wr]] = [yr|yi]; bf16 operands, f32 accumulation.
    y = jnp.dot(a.astype(jnp.bfloat16), wc_ref[...],
                preferred_element_type=jnp.float32) + bc_ref[...]        # (P, 2H)

    # ---- LayerNorm over [hidden, H/p, W/p] ----
    n2 = _packed_complex_layernorm(y, P * Hh, Hh)
    # complex affine (w2, b2) with the RoPE table pre-folded into the bias
    z = n2 * w2a_ref[...] + pltpu.roll(n2, Hh, 1) * w2b_ref[...] + bpe_ref[...]

    # Store directly in (2*hidden, P) layout (XLU transpose) so the wrapper needs no HBM
    # transpose; at production P this is also the lane-dense orientation.
    o_ref[0] = z.T


def rope_embedding(H, W, hidden_dim):
    """Re/Im parts of the 2D RoPE table from the reference module, each (hidden, H, W)."""
    fs = 100.0
    pos_H = jnp.arange(H, dtype=jnp.float32)
    pos_W = jnp.arange(W, dtype=jnp.float32)
    theta = fs ** (jnp.arange(0, hidden_dim, 2, dtype=jnp.float32) / (hidden_dim / 2))
    ang_H = theta[:, None] * pos_H[None, :]          # (hidden/2, H)
    ang_W = theta[:, None] * pos_W[None, :]          # (hidden/2, W)
    half = hidden_dim // 2
    emb_re = jnp.zeros((hidden_dim, H, W), jnp.float32)
    emb_im = jnp.zeros((hidden_dim, H, W), jnp.float32)
    emb_re = emb_re.at[0::2].set(jnp.broadcast_to(jnp.cos(ang_H)[:, :, None], (half, H, W)))
    emb_im = emb_im.at[0::2].set(jnp.broadcast_to(jnp.sin(ang_H)[:, :, None], (half, H, W)))
    emb_re = emb_re.at[1::2].set(jnp.broadcast_to(jnp.cos(ang_W)[:, None, :], (half, H, W)))
    emb_im = emb_im.at[1::2].set(jnp.broadcast_to(jnp.sin(ang_W)[:, None, :], (half, H, W)))
    return emb_re, emb_im


def patch_embedder_forward(x, params, patch_size, *, single_buffer_params=True):
    """x: complex64 (B, cin, H, W). Returns complex64 (B, hidden, H/p, W/p)."""
    B, cin, H, W = x.shape
    p = patch_size
    Hp, Wp = H // p, W // p
    P = Hp * Wp
    D = cin * p * p

    w1, b1, wc, bc, w2, b2 = params          # complex64 parameters
    hidden = wc.shape[0]
    D2, H2 = 2 * D, 2 * hidden

    def split(z):
        return jnp.real(z).astype(jnp.float32), jnp.imag(z).astype(jnp.float32)

    def pack(re, im):
        return jnp.concatenate([re, im], axis=-1)

    # Patchify + complex->float split + lane-pack. Under jit this fuses into a single HBM
    # read of x and write of x_pack (the complex->float split is unavoidable: Pallas has no
    # complex dtype).
    # TODO(synk): fold this remaining input copy into the kernel via strided/Element BlockSpec
    # index_maps over patch offsets so the kernel reads x's native NCHW layout directly.
    xp = x.reshape(B, cin, Hp, p, Wp, p).transpose(0, 2, 4, 1, 3, 5).reshape(B, P, D)
    x_pack = pack(*split(xp))                                    # (B, P, 2D)

    def rearrange_chw(z):                                        # (cin, H, W) -> (P, D)
        return z.reshape(cin, Hp, p, Wp, p).transpose(1, 3, 0, 2, 4).reshape(P, D)

    def roll_form(wr, wi):                                       # -> ([wr|wr], [-wi|wi])
        return jnp.concatenate([wr, wr], -1), jnp.concatenate([-wi, wi], -1)

    w1r, w1i = split(rearrange_chw(w1))
    w1a, w1b = roll_form(w1r, w1i)                               # (P, 2D) each
    b1_pack = pack(*split(rearrange_chw(b1)))                    # (P, 2D)

    # Conv weight (hidden, cin, p, p) -> block matrix (2D, 2H) = [[Wr, Wi], [-Wi, Wr]]; bf16
    # operands for native MXU rate, f32 accumulation.
    # TODO(synk): keep f32 operands if downstream tolerance requires full complex64 precision.
    wr, wi = split(wc.reshape(hidden, D).T)                      # (D, hidden) each
    wc_blk = jnp.concatenate(
        [jnp.concatenate([wr, wi], axis=1),
         jnp.concatenate([-wi, wr], axis=1)], axis=0).astype(jnp.bfloat16)   # (2D, 2H)
    bc_pack = pack(*split(bc.reshape(1, hidden)))                # (1, 2H)

    def rearrange_hpq(z):                                        # (hidden, Hp, Wp) -> (P, hidden)
        return z.transpose(1, 2, 0).reshape(P, hidden)

    w2r, w2i = split(rearrange_hpq(w2))
    w2a, w2b = roll_form(w2r, w2i)                               # (P, 2H) each

    # Fold LayerNorm2 bias and the RoPE table into one constant.
    pe_re, pe_im = rope_embedding(Hp, Wp, hidden)
    b2r, b2i = split(rearrange_hpq(b2))
    bpe_pack = pack(b2r + pe_re.transpose(1, 2, 0).reshape(P, hidden),
                    b2i + pe_im.transpose(1, 2, 0).reshape(P, hidden))       # (P, 2H)

    # --- Pallas call ----------------------------------------------------------
    shared_kwargs = {"pipeline_mode": pl.Buffered(1)} if single_buffer_params else {}

    def shared(shape):   # grid-invariant parameter stream: single-buffered, DMA'd once
        return pl.BlockSpec(shape, lambda b: (0,) * len(shape), **shared_kwargs)

    # VMEM budget: single-buffered params + double-buffered x/out blocks + temporaries, with
    # headroom below physical VMEM (64 MiB on v7x, 128 MiB on v5e/v6e).
    try:
        phys_vmem = int(getattr(pltpu.get_tpu_info(), "vmem_capacity_bytes", 64 << 20))
    except Exception:
        phys_vmem = 64 << 20
    param_bytes = 4 * (3 * P * D2 + 3 * P * H2 + H2) + 2 * D2 * H2
    io_bytes = 2 * 4 * P * D2 + 2 * 4 * H2 * P
    tmp_bytes = 4 * (6 * P * D2 + 6 * P * H2)
    vmem_limit = int(max(min(param_bytes + io_bytes + tmp_bytes, (phys_vmem * 3) // 4),
                         16 << 20))

    # Parameters with constant index_maps are DMA'd once, not per grid step.
    cost = pl.CostEstimate(
        flops=int(2 * B * P * D2 * H2 + 40 * B * P * (D2 + H2)),
        transcendentals=int(2 * B),
        bytes_accessed=int(4 * x_pack.size + param_bytes + 4 * B * H2 * P),
    )

    # TODO(synk): production-size P needs a P-tiling grid axis with carried LN statistics
    # (stats pass + apply pass) to bound VMEM on v7x and feed its second TensorCore at B == 1;
    # several batch items could also be folded into one grid step to grow the MXU M dimension.
    out_pack = pl.pallas_call(
        patch_embed_kernel,
        out_shape=jax.ShapeDtypeStruct((B, H2, P), jnp.float32),
        grid=(B,),
        in_specs=[
            pl.BlockSpec((1, P, D2), lambda b: (b, 0, 0)),   # x (re|im lane-packed)
            shared((P, D2)),          # w1 [wr|wr]
            shared((P, D2)),          # w1 [-wi|wi]
            shared((P, D2)),          # b1
            shared((D2, H2)),         # conv weight block matrix (bf16)
            shared((1, H2)),          # conv bias
            shared((P, H2)),          # w2 [wr|wr]
            shared((P, H2)),          # w2 [-wi|wi]
            shared((P, H2)),          # b2 + rope
        ],
        out_specs=pl.BlockSpec((1, H2, P), lambda b: (b, 0, 0)),
        compiler_params=pltpu.CompilerParams(
            dimension_semantics=("parallel",),
            vmem_limit_bytes=vmem_limit),
        cost_estimate=cost,
    )(x_pack, w1a, w1b, b1_pack, wc_blk, bc_pack, w2a, w2b, bpe_pack)

    # (B, 2H, P): only a free reshape + re/im recombination remain outside the kernel.
    z = out_pack[:, :hidden, :] + 1j * out_pack[:, hidden:, :]
    return z.astype(jnp.complex64).reshape(B, hidden, Hp, Wp)


def init_params(key, cin, image_size, hidden, patch_size):
    H = W = image_size
    ks = jax.random.split(key, 12)

    def cplx(kr, ki, shape, scale=0.1):
        return (scale * jax.random.normal(kr, shape, jnp.float32)
                + 1j * scale * jax.random.normal(ki, shape, jnp.float32)).astype(jnp.complex64)

    w1 = (jnp.ones((cin, H, W), jnp.complex64) + cplx(ks[0], ks[1], (cin, H, W)))
    b1 = cplx(ks[2], ks[3], (cin, H, W))
    wc = cplx(ks[4], ks[5], (hidden, cin, patch_size, patch_size))
    bc = cplx(ks[6], ks[7], (hidden,))
    Hp, Wp = H // patch_size, W // patch_size
    w2 = (jnp.ones((hidden, Hp, Wp), jnp.complex64) + cplx(ks[8], ks[9], (hidden, Hp, Wp)))
    b2 = cplx(ks[10], ks[11], (hidden, Hp, Wp))
    return (w1, b1, wc, bc, w2, b2)


if __name__ == "__main__":
    B, cin, image_size, patch_size, hidden = 2, 4, 16, 4, 32

    key = jax.random.PRNGKey(0)
    kx_re, kx_im, kp = jax.random.split(key, 3)
    x = (jax.random.normal(kx_re, (B, cin, image_size, image_size), jnp.float32)
         + 1j * jax.random.normal(kx_im, (B, cin, image_size, image_size), jnp.float32)
         ).astype(jnp.complex64)
    params = init_params(kp, cin, image_size, hidden, patch_size)

    fwd = jax.jit(patch_embedder_forward,
                  static_argnames=("patch_size", "single_buffer_params"))
    try:
        out = jax.block_until_ready(fwd(x, params, patch_size=patch_size))
    except Exception:
        # TODO(synk): this JAX build rejected pl.Buffered(1); fall back to default buffering.
        out = jax.block_until_ready(
            fwd(x, params, patch_size=patch_size, single_buffer_params=False))

    assert out.shape == (B, hidden, image_size // patch_size, image_size // patch_size)
    assert out.dtype == jnp.complex64
    print("KERNEL_OK")
</pallas_src>

<mosaic_0001>
module attributes {stable_mosaic.version = 11 : i64} {
  func.func @patch_embed_kernel(%arg0: i32, %arg1: memref<1x16x128xf32, #tpu.memory_space<vmem>>, %arg2: memref<16x128xf32, #tpu.memory_space<vmem>>, %arg3: memref<16x128xf32, #tpu.memory_space<vmem>>, %arg4: memref<16x128xf32, #tpu.memory_space<vmem>>, %arg5: memref<128x64xbf16, #tpu.memory_space<vmem>>, %arg6: memref<1x64xf32, #tpu.memory_space<vmem>>, %arg7: memref<16x64xf32, #tpu.memory_space<vmem>>, %arg8: memref<16x64xf32, #tpu.memory_space<vmem>>, %arg9: memref<16x64xf32, #tpu.memory_space<vmem>>, %arg10: memref<1x64x16xf32, #tpu.memory_space<vmem>>) attributes {dimension_semantics = [#tpu.dimension_semantics<parallel>], iteration_bounds = array<i64: 2>, scalar_prefetch = 0 : i64, scratch_operands = 0 : i64, tpu.core_type = #tpu.core_type<tc>, window_params = [{transform_indices = @transform_0, window_bounds = array<i64: 1, 16, 128>}, {pipeline_mode = #tpu.pipeline_mode<synchronous>, transform_indices = @transform_1, window_bounds = array<i64: 16, 128>}, {pipeline_mode = #tpu.pipeline_mode<synchronous>, transform_indices = @transform_2, window_bounds = array<i64: 16, 128>}, {pipeline_mode = #tpu.pipeline_mode<synchronous>, transform_indices = @transform_3, window_bounds = array<i64: 16, 128>}, {pipeline_mode = #tpu.pipeline_mode<synchronous>, transform_indices = @transform_4, window_bounds = array<i64: 128, 64>}, {pipeline_mode = #tpu.pipeline_mode<synchronous>, transform_indices = @transform_5, window_bounds = array<i64: 1, 64>}, {pipeline_mode = #tpu.pipeline_mode<synchronous>, transform_indices = @transform_6, window_bounds = array<i64: 16, 64>}, {pipeline_mode = #tpu.pipeline_mode<synchronous>, transform_indices = @transform_7, window_bounds = array<i64: 16, 64>}, {pipeline_mode = #tpu.pipeline_mode<synchronous>, transform_indices = @transform_8, window_bounds = array<i64: 16, 64>}, {transform_indices = @transform_9, window_bounds = array<i64: 1, 64, 16>}]} {
    %c0 = arith.constant 0 : index
    %c0_0 = arith.constant 0 : index
    %c0_1 = arith.constant 0 : index
    %0 = vector.load %arg1[%c0, %c0_0, %c0_1] : memref<1x16x128xf32, #tpu.memory_space<vmem>>, vector<1x16x128xf32>
    %1 = vector.shape_cast %0 : vector<1x16x128xf32> to vector<16x128xf32>
    %cst = arith.constant dense<0.000000e+00> : vector<128xf32>
    %2 = vector.multi_reduction <add>, %1, %cst [0] : vector<16x128xf32> to vector<128xf32>
    %3 = vector.shape_cast %2 : vector<128xf32> to vector<1x128xf32>
    %4 = vector.extract_strided_slice %3 {offsets = [0, 0], sizes = [1, 64], strides = [1, 1]} : vector<1x128xf32> to vector<1x64xf32>
    %cst_2 = arith.constant dense<0.000000e+00> : vector<1xf32>
    %5 = vector.multi_reduction <add>, %4, %cst_2 [1] : vector<1x64xf32> to vector<1xf32>
    %6 = vector.shape_cast %5 : vector<1xf32> to vector<1x1xf32>
    %cst_3 = arith.constant 9.765625E-4 : f32
    %7 = vector.broadcast %cst_3 : f32 to vector<1x1xf32>
    %8 = arith.mulf %6, %7 : vector<1x1xf32>
    %9 = vector.extract_strided_slice %3 {offsets = [0, 64], sizes = [1, 64], strides = [1, 1]} : vector<1x128xf32> to vector<1x64xf32>
    %cst_4 = arith.constant dense<0.000000e+00> : vector<1xf32>
    %10 = vector.multi_reduction <add>, %9, %cst_4 [1] : vector<1x64xf32> to vector<1xf32>
    %11 = vector.shape_cast %10 : vector<1xf32> to vector<1x1xf32>
    %cst_5 = arith.constant 9.765625E-4 : f32
    %12 = vector.broadcast %cst_5 : f32 to vector<1x1xf32>
    %13 = arith.mulf %11, %12 : vector<1x1xf32>
    %14 = tpu.iota {dimensions = array<i32: 1>} : vector<1x128xi32>
    %c64_i32 = arith.constant 64 : i32
    %15 = vector.broadcast %c64_i32 : i32 to vector<1x128xi32>
    %16 = arith.cmpi slt, %14, %15 : vector<1x128xi32>
    %17 = vector.shape_cast %8 : vector<1x1xf32> to vector<1x1xf32>
    %18 = vector.broadcast %17 : vector<1x1xf32> to vector<1x128xf32>
    %19 = vector.shape_cast %13 : vector<1x1xf32> to vector<1x1xf32>
    %20 = vector.broadcast %19 : vector<1x1xf32> to vector<1x128xf32>
    %21 = arith.select %16, %18, %20 : vector<1x128xi1>, vector<1x128xf32>
    %22 = vector.broadcast %21 : vector<1x128xf32> to vector<16x128xf32>
    %23 = arith.subf %1, %22 : vector<16x128xf32>
    %24 = arith.mulf %23, %23 : vector<16x128xf32>
    %25 = vector.shape_cast %24 : vector<16x128xf32> to vector<1x16x128xf32>
    %cst_6 = arith.constant dense<0.000000e+00> : vector<1xf32>
    %26 = vector.multi_reduction <add>, %25, %cst_6 [1, 2] : vector<1x16x128xf32> to vector<1xf32>
    %27 = vector.shape_cast %26 : vector<1xf32> to vector<1x1x1xf32>
    %28 = vector.extract %27[0, 0, 0] : f32 from vector<1x1x1xf32>
    %29 = vector.broadcast %28 : f32 to vector<1x1xf32>
    %cst_7 = arith.constant 9.765625E-4 : f32
    %30 = vector.broadcast %cst_7 : f32 to vector<1x1xf32>
    %31 = arith.mulf %29, %30 : vector<1x1xf32>
    %cst_8 = arith.constant 9.99999974E-6 : f32
    %32 = vector.broadcast %cst_8 : f32 to vector<1x1xf32>
    %33 = arith.addf %31, %32 : vector<1x1xf32>
    %34 = math.rsqrt %33 : vector<1x1xf32>
    %35 = vector.broadcast %34 : vector<1x1xf32> to vector<16x128xf32>
    %36 = arith.mulf %23, %35 : vector<16x128xf32>
    %c0_9 = arith.constant 0 : index
    %c0_10 = arith.constant 0 : index
    %37 = vector.load %arg2[%c0_9, %c0_10] : memref<16x128xf32, #tpu.memory_space<vmem>>, vector<16x128xf32>
    %38 = arith.mulf %36, %37 : vector<16x128xf32>
    %c64_i32_11 = arith.constant 64 : i32
    %39 = tpu.dynamic_rotate %36 by %c64_i32_11 dim 1 : vector<16x128xf32>, i32 -> vector<16x128xf32>
    %c0_12 = arith.constant 0 : index
    %c0_13 = arith.constant 0 : index
    %40 = vector.load %arg3[%c0_12, %c0_13] : memref<16x128xf32, #tpu.memory_space<vmem>>, vector<16x128xf32>
    %41 = arith.mulf %39, %40 : vector<16x128xf32>
    %42 = arith.addf %38, %41 : vector<16x128xf32>
    %c0_14 = arith.constant 0 : index
    %c0_15 = arith.constant 0 : index
    %43 = vector.load %arg4[%c0_14, %c0_15] : memref<16x128xf32, #tpu.memory_space<vmem>>, vector<16x128xf32>
    %44 = arith.addf %42, %43 : vector<16x128xf32>
    %45 = arith.truncf %44 : vector<16x128xf32> to vector<16x128xbf16>
    %c0_16 = arith.constant 0 : index
    %c0_17 = arith.constant 0 : index
    %46 = vector.load %arg5[%c0_16, %c0_17] : memref<128x64xbf16, #tpu.memory_space<vmem>>, vector<128x64xbf16>
    %cst_18 = arith.constant dense<0.000000e+00> : vector<16x64xf32>
    %47 = tpu.matmul %45, %46, %cst_18 {dimension_numbers = #tpu.dot_dimension_numbers<[1], [0], [0], [1], [0, 0, 1, 1], [], []>} : vector<16x128xbf16>, vector<128x64xbf16>, vector<16x64xf32> -> vector<16x64xf32>
    %c0_19 = arith.constant 0 : index
    %c0_20 = arith.constant 0 : index
    %48 = vector.load %arg6[%c0_19, %c0_20] : memref<1x64xf32, #tpu.memory_space<vmem>>, vector<1x64xf32>
    %49 = vector.broadcast %48 : vector<1x64xf32> to vector<16x64xf32>
    %50 = arith.addf %47, %49 : vector<16x64xf32>
    %cst_21 = arith.constant dense<0.000000e+00> : vector<64xf32>
    %51 = vector.multi_reduction <add>, %50, %cst_21 [0] : vector<16x64xf32> to vector<64xf32>
    %52 = vector.shape_cast %51 : vector<64xf32> to vector<1x64xf32>
    %53 = vector.extract_strided_slice %52 {offsets = [0, 0], sizes = [1, 32], strides = [1, 1]} : vector<1x64xf32> to vector<1x32xf32>
    %cst_22 = arith.constant dense<0.000000e+00> : vector<1xf32>
    %54 = vector.multi_reduction <add>, %53, %cst_22 [1] : vector<1x32xf32> to vector<1xf32>
    %55 = vector.shape_cast %54 : vector<1xf32> to vector<1x1xf32>
    %cst_23 = arith.constant 0.001953125 : f32
    %56 = vector.broadcast %cst_23 : f32 to vector<1x1xf32>
    %57 = arith.mulf %55, %56 : vector<1x1xf32>
    %58 = vector.extract_strided_slice %52 {offsets = [0, 32], sizes = [1, 32], strides = [1, 1]} : vector<1x64xf32> to vector<1x32xf32>
    %cst_24 = arith.constant dense<0.000000e+00> : vector<1xf32>
    %59 = vector.multi_reduction <add>, %58, %cst_24 [1] : vector<1x32xf32> to vector<1xf32>
    %60 = vector.shape_cast %59 : vector<1xf32> to vector<1x1xf32>
    %cst_25 = arith.constant 0.001953125 : f32
    %61 = vector.broadcast %cst_25 : f32 to vector<1x1xf32>
    %62 = arith.mulf %60, %61 : vector<1x1xf32>
    %63 = tpu.iota {dimensions = array<i32: 1>} : vector<1x64xi32>
    %c32_i32 = arith.constant 32 : i32
    %64 = vector.broadcast %c32_i32 : i32 to vector<1x64xi32>
    %65 = arith.cmpi slt, %63, %64 : vector<1x64xi32>
    %66 = vector.shape_cast %57 : vector<1x1xf32> to vector<1x1xf32>
    %67 = vector.broadcast %66 : vector<1x1xf32> to vector<1x64xf32>
    %68 = vector.shape_cast %62 : vector<1x1xf32> to vector<1x1xf32>
    %69 = vector.broadcast %68 : vector<1x1xf32> to vector<1x64xf32>
    %70 = arith.select %65, %67, %69 : vector<1x64xi1>, vector<1x64xf32>
    %71 = vector.broadcast %70 : vector<1x64xf32> to vector<16x64xf32>
    %72 = arith.subf %50, %71 : vector<16x64xf32>
    %73 = arith.mulf %72, %72 : vector<16x64xf32>
    %74 = vector.shape_cast %73 : vector<16x64xf32> to vector<1x16x64xf32>
    %cst_26 = arith.constant dense<0.000000e+00> : vector<1xf32>
    %75 = vector.multi_reduction <add>, %74, %cst_26 [1, 2] : vector<1x16x64xf32> to vector<1xf32>
    %76 = vector.shape_cast %75 : vector<1xf32> to vector<1x1x1xf32>
    %77 = vector.extract %76[0, 0, 0] : f32 from vector<1x1x1xf32>
    %78 = vector.broadcast %77 : f32 to vector<1x1xf32>
    %cst_27 = arith.constant 0.001953125 : f32
    %79 = vector.broadcast %cst_27 : f32 to vector<1x1xf32>
    %80 = arith.mulf %78, %79 : vector<1x1xf32>
    %cst_28 = arith.constant 9.99999974E-6 : f32
    %81 = vector.broadcast %cst_28 : f32 to vector<1x1xf32>
    %82 = arith.addf %80, %81 : vector<1x1xf32>
    %83 = math.rsqrt %82 : vector<1x1xf32>
    %84 = vector.broadcast %83 : vector<1x1xf32> to vector<16x64xf32>
    %85 = arith.mulf %72, %84 : vector<16x64xf32>
    %c0_29 = arith.constant 0 : index
    %c0_30 = arith.constant 0 : index
    %86 = vector.load %arg7[%c0_29, %c0_30] : memref<16x64xf32, #tpu.memory_space<vmem>>, vector<16x64xf32>
    %87 = arith.mulf %85, %86 : vector<16x64xf32>
    %c32_i32_31 = arith.constant 32 : i32
    %88 = tpu.dynamic_rotate %85 by %c32_i32_31 dim 1 : vector<16x64xf32>, i32 -> vector<16x64xf32>
    %c0_32 = arith.constant 0 : index
    %c0_33 = arith.constant 0 : index
    %89 = vector.load %arg8[%c0_32, %c0_33] : memref<16x64xf32, #tpu.memory_space<vmem>>, vector<16x64xf32>
    %90 = arith.mulf %88, %89 : vector<16x64xf32>
    %91 = arith.addf %87, %90 : vector<16x64xf32>
    %c0_34 = arith.constant 0 : index
    %c0_35 = arith.constant 0 : index
    %92 = vector.load %arg9[%c0_34, %c0_35] : memref<16x64xf32, #tpu.memory_space<vmem>>, vector<16x64xf32>
    %93 = arith.addf %91, %92 : vector<16x64xf32>
    %94 = tpu.transpose %93, [1, 0] : vector<16x64xf32> -> vector<64x16xf32>
    %c0_36 = arith.constant 0 : index
    %c0_37 = arith.constant 0 : index
    %c0_38 = arith.constant 0 : index
    %95 = vector.load %arg10[%c0_36, %c0_37, %c0_38] : memref<1x64x16xf32, #tpu.memory_space<vmem>>, vector<1x64x16xf32>
    %96 = vector.shape_cast %95 : vector<1x64x16xf32> to vector<64x16xf32>
    %97 = vector.shape_cast %94 : vector<64x16xf32> to vector<1x64x16xf32>
    tpu.vector_store %arg10[%c0_36, %c0_37, %c0_38], %97 {strides = array<i32>} : memref<1x64x16xf32, #tpu.memory_space<vmem>>, vector<1x64x16xf32>,
    return
  }
  func.func @transform_0(%arg0: i32) -> (i32, i32, i32) {
    %c0_i32 = arith.constant 0 : i32
    %c0_i32_0 = arith.constant 0 : i32
    %c0_i32_1 = arith.constant 0 : i32
    return %arg0, %c0_i32, %c0_i32_0 : i32, i32, i32
  }
  func.func @transform_1(%arg0: i32) -> (i32, i32) {
    %c0_i32 = arith.constant 0 : i32
    %c0_i32_0 = arith.constant 0 : i32
    %c0_i32_1 = arith.constant 0 : i32
    return %c0_i32, %c0_i32_0 : i32, i32
  }
  func.func @transform_2(%arg0: i32) -> (i32, i32) {
    %c0_i32 = arith.constant 0 : i32
    %c0_i32_0 = arith.constant 0 : i32
    %c0_i32_1 = arith.constant 0 : i32
    return %c0_i32, %c0_i32_0 : i32, i32
  }
  func.func @transform_3(%arg0: i32) -> (i32, i32) {
    %c0_i32 = arith.constant 0 : i32
    %c0_i32_0 = arith.constant 0 : i32
    %c0_i32_1 = arith.constant 0 : i32
    return %c0_i32, %c0_i32_0 : i32, i32
  }
  func.func @transform_4(%arg0: i32) -> (i32, i32) {
    %c0_i32 = arith.constant 0 : i32
    %c0_i32_0 = arith.constant 0 : i32
    %c0_i32_1 = arith.constant 0 : i32
    return %c0_i32, %c0_i32_0 : i32, i32
  }
  func.func @transform_5(%arg0: i32) -> (i32, i32) {
    %c0_i32 = arith.constant 0 : i32
    %c0_i32_0 = arith.constant 0 : i32
    %c0_i32_1 = arith.constant 0 : i32
    return %c0_i32, %c0_i32_0 : i32, i32
  }
  func.func @transform_6(%arg0: i32) -> (i32, i32) {
    %c0_i32 = arith.constant 0 : i32
    %c0_i32_0 = arith.constant 0 : i32
    %c0_i32_1 = arith.constant 0 : i32
    return %c0_i32, %c0_i32_0 : i32, i32
  }
  func.func @transform_7(%arg0: i32) -> (i32, i32) {
    %c0_i32 = arith.constant 0 : i32
    %c0_i32_0 = arith.constant 0 : i32
    %c0_i32_1 = arith.constant 0 : i32
    return %c0_i32, %c0_i32_0 : i32, i32
  }
  func.func @transform_8(%arg0: i32) -> (i32, i32) {
    %c0_i32 = arith.constant 0 : i32
    %c0_i32_0 = arith.constant 0 : i32
    %c0_i32_1 = arith.constant 0 : i32
    return %c0_i32, %c0_i32_0 : i32, i32
  }
  func.func @transform_9(%arg0: i32) -> (i32, i32, i32) {
    %c0_i32 = arith.constant 0 : i32
    %c0_i32_0 = arith.constant 0 : i32
    %c0_i32_1 = arith.constant 0 : i32
    return %arg0, %c0_i32, %c0_i32_0 : i32, i32, i32
  }
}

module attributes {stable_mosaic.version = 11 : i64} {
  func.func @patch_embed_kernel(%arg0: i32, %arg1: memref<1x16x128xf32, #tpu.memory_space<vmem>>, %arg2: memref<16x128xf32, #tpu.memory_space<vmem>>, %arg3: memref<16x128xf32, #tpu.memory_space<vmem>>, %arg4: memref<16x128xf32, #tpu.memory_space<vmem>>, %arg5: memref<128x64xbf16, #tpu.memory_space<vmem>>, %arg6: memref<1x64xf32, #tpu.memory_space<vmem>>, %arg7: memref<16x64xf32, #tpu.memory_space<vmem>>, %arg8: memref<16x64xf32, #tpu.memory_space<vmem>>, %arg9: memref<16x64xf32, #tpu.memory_space<vmem>>, %arg10: memref<1x64x16xf32, #tpu.memory_space<vmem>>) attributes {dimension_semantics = [#tpu.dimension_semantics<parallel>], iteration_bounds = array<i64: 2>, scalar_prefetch = 0 : i64, scratch_operands = 0 : i64, tpu.core_type = #tpu.core_type<tc>, window_params = [{transform_indices = @transform_0, window_bounds = array<i64: 1, 16, 128>}, {pipeline_mode = #tpu.pipeline_mode<synchronous>, transform_indices = @transform_1, window_bounds = array<i64: 16, 128>}, {pipeline_mode = #tpu.pipeline_mode<synchronous>, transform_indices = @transform_2, window_bounds = array<i64: 16, 128>}, {pipeline_mode = #tpu.pipeline_mode<synchronous>, transform_indices = @transform_3, window_bounds = array<i64: 16, 128>}, {pipeline_mode = #tpu.pipeline_mode<synchronous>, transform_indices = @transform_4, window_bounds = array<i64: 128, 64>}, {pipeline_mode = #tpu.pipeline_mode<synchronous>, transform_indices = @transform_5, window_bounds = array<i64: 1, 64>}, {pipeline_mode = #tpu.pipeline_mode<synchronous>, transform_indices = @transform_6, window_bounds = array<i64: 16, 64>}, {pipeline_mode = #tpu.pipeline_mode<synchronous>, transform_indices = @transform_7, window_bounds = array<i64: 16, 64>}, {pipeline_mode = #tpu.pipeline_mode<synchronous>, transform_indices = @transform_8, window_bounds = array<i64: 16, 64>}, {transform_indices = @transform_9, window_bounds = array<i64: 1, 64, 16>}]} {
    %c0 = arith.constant 0 : index
    %c0_0 = arith.constant 0 : index
    %c0_1 = arith.constant 0 : index
    %0 = vector.load %arg1[%c0, %c0_0, %c0_1] : memref<1x16x128xf32, #tpu.memory_space<vmem>>, vector<1x16x128xf32>
    %1 = vector.shape_cast %0 : vector<1x16x128xf32> to vector<16x128xf32>
    %cst = arith.constant dense<0.000000e+00> : vector<128xf32>
    %2 = vector.multi_reduction <add>, %1, %cst [0] : vector<16x128xf32> to vector<128xf32>
    %3 = vector.shape_cast %2 : vector<128xf32> to vector<1x128xf32>
    %4 = vector.extract_strided_slice %3 {offsets = [0, 0], sizes = [1, 64], strides = [1, 1]} : vector<1x128xf32> to vector<1x64xf32>
    %cst_2 = arith.constant dense<0.000000e+00> : vector<1xf32>
    %5 = vector.multi_reduction <add>, %4, %cst_2 [1] : vector<1x64xf32> to vector<1xf32>
    %6 = vector.shape_cast %5 : vector<1xf32> to vector<1x1xf32>
    %cst_3 = arith.constant 9.765625E-4 : f32
    %7 = vector.broadcast %cst_3 : f32 to vector<1x1xf32>
    %8 = arith.mulf %6, %7 : vector<1x1xf32>
    %9 = vector.extract_strided_slice %3 {offsets = [0, 64], sizes = [1, 64], strides = [1, 1]} : vector<1x128xf32> to vector<1x64xf32>
    %cst_4 = arith.constant dense<0.000000e+00> : vector<1xf32>
    %10 = vector.multi_reduction <add>, %9, %cst_4 [1] : vector<1x64xf32> to vector<1xf32>
    %11 = vector.shape_cast %10 : vector<1xf32> to vector<1x1xf32>
    %cst_5 = arith.constant 9.765625E-4 : f32
    %12 = vector.broadcast %cst_5 : f32 to vector<1x1xf32>
    %13 = arith.mulf %11, %12 : vector<1x1xf32>
    %14 = tpu.iota {dimensions = array<i32: 1>} : vector<1x128xi32>
    %c64_i32 = arith.constant 64 : i32
    %15 = vector.broadcast %c64_i32 : i32 to vector<1x128xi32>
    %16 = arith.cmpi slt, %14, %15 : vector<1x128xi32>
    %17 = vector.shape_cast %8 : vector<1x1xf32> to vector<1x1xf32>
    %18 = vector.broadcast %17 : vector<1x1xf32> to vector<1x128xf32>
    %19 = vector.shape_cast %13 : vector<1x1xf32> to vector<1x1xf32>
    %20 = vector.broadcast %19 : vector<1x1xf32> to vector<1x128xf32>
    %21 = arith.select %16, %18, %20 : vector<1x128xi1>, vector<1x128xf32>
    %22 = vector.broadcast %21 : vector<1x128xf32> to vector<16x128xf32>
    %23 = arith.subf %1, %22 : vector<16x128xf32>
    %24 = arith.mulf %23, %23 : vector<16x128xf32>
    %25 = vector.shape_cast %24 : vector<16x128xf32> to vector<1x16x128xf32>
    %cst_6 = arith.constant dense<0.000000e+00> : vector<1xf32>
    %26 = vector.multi_reduction <add>, %25, %cst_6 [1, 2] : vector<1x16x128xf32> to vector<1xf32>
    %27 = vector.shape_cast %26 : vector<1xf32> to vector<1x1x1xf32>
    %28 = vector.extract %27[0, 0, 0] : f32 from vector<1x1x1xf32>
    %29 = vector.broadcast %28 : f32 to vector<1x1xf32>
    %cst_7 = arith.constant 9.765625E-4 : f32
    %30 = vector.broadcast %cst_7 : f32 to vector<1x1xf32>
    %31 = arith.mulf %29, %30 : vector<1x1xf32>
    %cst_8 = arith.constant 9.99999974E-6 : f32
    %32 = vector.broadcast %cst_8 : f32 to vector<1x1xf32>
    %33 = arith.addf %31, %32 : vector<1x1xf32>
    %34 = math.rsqrt %33 : vector<1x1xf32>
    %35 = vector.broadcast %34 : vector<1x1xf32> to vector<16x128xf32>
    %36 = arith.mulf %23, %35 : vector<16x128xf32>
    %c0_9 = arith.constant 0 : index
    %c0_10 = arith.constant 0 : index
    %37 = vector.load %arg2[%c0_9, %c0_10] : memref<16x128xf32, #tpu.memory_space<vmem>>, vector<16x128xf32>
    %38 = arith.mulf %36, %37 : vector<16x128xf32>
    %c64_i32_11 = arith.constant 64 : i32
    %39 = tpu.dynamic_rotate %36 by %c64_i32_11 dim 1 : vector<16x128xf32>, i32 -> vector<16x128xf32>
    %c0_12 = arith.constant 0 : index
    %c0_13 = arith.constant 0 : index
    %40 = vector.load %arg3[%c0_12, %c0_13] : memref<16x128xf32, #tpu.memory_space<vmem>>, vector<16x128xf32>
    %41 = arith.mulf %39, %40 : vector<16x128xf32>
    %42 = arith.addf %38, %41 : vector<16x128xf32>
    %c0_14 = arith.constant 0 : index
    %c0_15 = arith.constant 0 : index
    %43 = vector.load %arg4[%c0_14, %c0_15] : memref<16x128xf32, #tpu.memory_space<vmem>>, vector<16x128xf32>
    %44 = arith.addf %42, %43 : vector<16x128xf32>
    %45 = arith.truncf %44 : vector<16x128xf32> to vector<16x128xbf16>
    %c0_16 = arith.constant 0 : index
    %c0_17 = arith.constant 0 : index
    %46 = vector.load %arg5[%c0_16, %c0_17] : memref<128x64xbf16, #tpu.memory_space<vmem>>, vector<128x64xbf16>
    %cst_18 = arith.constant dense<0.000000e+00> : vector<16x64xf32>
    %47 = tpu.matmul %45, %46, %cst_18 {dimension_numbers = #tpu.dot_dimension_numbers<[1], [0], [0], [1], [0, 0, 1, 1], [], []>} : vector<16x128xbf16>, vector<128x64xbf16>, vector<16x64xf32> -> vector<16x64xf32>
    %c0_19 = arith.constant 0 : index
    %c0_20 = arith.constant 0 : index
    %48 = vector.load %arg6[%c0_19, %c0_20] : memref<1x64xf32, #tpu.memory_space<vmem>>, vector<1x64xf32>
    %49 = vector.broadcast %48 : vector<1x64xf32> to vector<16x64xf32>
    %50 = arith.addf %47, %49 : vector<16x64xf32>
    %cst_21 = arith.constant dense<0.000000e+00> : vector<64xf32>
    %51 = vector.multi_reduction <add>, %50, %cst_21 [0] : vector<16x64xf32> to vector<64xf32>
    %52 = vector.shape_cast %51 : vector<64xf32> to vector<1x64xf32>
    %53 = vector.extract_strided_slice %52 {offsets = [0, 0], sizes = [1, 32], strides = [1, 1]} : vector<1x64xf32> to vector<1x32xf32>
    %cst_22 = arith.constant dense<0.000000e+00> : vector<1xf32>
    %54 = vector.multi_reduction <add>, %53, %cst_22 [1] : vector<1x32xf32> to vector<1xf32>
    %55 = vector.shape_cast %54 : vector<1xf32> to vector<1x1xf32>
    %cst_23 = arith.constant 0.001953125 : f32
    %56 = vector.broadcast %cst_23 : f32 to vector<1x1xf32>
    %57 = arith.mulf %55, %56 : vector<1x1xf32>
    %58 = vector.extract_strided_slice %52 {offsets = [0, 32], sizes = [1, 32], strides = [1, 1]} : vector<1x64xf32> to vector<1x32xf32>
    %cst_24 = arith.constant dense<0.000000e+00> : vector<1xf32>
    %59 = vector.multi_reduction <add>, %58, %cst_24 [1] : vector<1x32xf32> to vector<1xf32>
    %60 = vector.shape_cast %59 : vector<1xf32> to vector<1x1xf32>
    %cst_25 = arith.constant 0.001953125 : f32
    %61 = vector.broadcast %cst_25 : f32 to vector<1x1xf32>
    %62 = arith.mulf %60, %61 : vector<1x1xf32>
    %63 = tpu.iota {dimensions = array<i32: 1>} : vector<1x64xi32>
    %c32_i32 = arith.constant 32 : i32
    %64 = vector.broadcast %c32_i32 : i32 to vector<1x64xi32>
    %65 = arith.cmpi slt, %63, %64 : vector<1x64xi32>
    %66 = vector.shape_cast %57 : vector<1x1xf32> to vector<1x1xf32>
    %67 = vector.broadcast %66 : vector<1x1xf32> to vector<1x64xf32>
    %68 = vector.shape_cast %62 : vector<1x1xf32> to vector<1x1xf32>
    %69 = vector.broadcast %68 : vector<1x1xf32> to vector<1x64xf32>
    %70 = arith.select %65, %67, %69 : vector<1x64xi1>, vector<1x64xf32>
    %71 = vector.broadcast %70 : vector<1x64xf32> to vector<16x64xf32>
    %72 = arith.subf %50, %71 : vector<16x64xf32>
    %73 = arith.mulf %72, %72 : vector<16x64xf32>
    %74 = vector.shape_cast %73 : vector<16x64xf32> to vector<1x16x64xf32>
    %cst_26 = arith.constant dense<0.000000e+00> : vector<1xf32>
    %75 = vector.multi_reduction <add>, %74, %cst_26 [1, 2] : vector<1x16x64xf32> to vector<1xf32>
    %76 = vector.shape_cast %75 : vector<1xf32> to vector<1x1x1xf32>
    %77 = vector.extract %76[0, 0, 0] : f32 from vector<1x1x1xf32>
    %78 = vector.broadcast %77 : f32 to vector<1x1xf32>
    %cst_27 = arith.constant 0.001953125 : f32
    %79 = vector.broadcast %cst_27 : f32 to vector<1x1xf32>
    %80 = arith.mulf %78, %79 : vector<1x1xf32>
    %cst_28 = arith.constant 9.99999974E-6 : f32
    %81 = vector.broadcast %cst_28 : f32 to vector<1x1xf32>
    %82 = arith.addf %80, %81 : vector<1x1xf32>
    %83 = math.rsqrt %82 : vector<1x1xf32>
    %84 = vector.broadcast %83 : vector<1x1xf32> to vector<16x64xf32>
    %85 = arith.mulf %72, %84 : vector<16x64xf32>
    %c0_29 = arith.constant 0 : index
    %c0_30 = arith.constant 0 : index
    %86 = vector.load %arg7[%c0_29, %c0_30] : memref<16x64xf32, #tpu.memory_space<vmem>>, vector<16x64xf32>
    %87 = arith.mulf %85, %86 : vector<16x64xf32>
    %c32_i32_31 = arith.constant 32 : i32
    %88 = tpu.dynamic_rotate %85 by %c32_i32_31 dim 1 : vector<16x64xf32>, i32 -> vector<16x64xf32>
    %c0_32 = arith.constant 0 : index
    %c0_33 = arith.constant 0 : index
    %89 = vector.load %arg8[%c0_32, %c0_33] : memref<16x64xf32, #tpu.memory_space<vmem>>, vector<16x64xf32>
    %90 = arith.mulf %88, %89 : vector<16x64xf32>
    %91 = arith.addf %87, %90 : vector<16x64xf32>
    %c0_34 = arith.constant 0 : index
    %c0_35 = arith.constant 0 : index
    %92 = vector.load %arg9[%c0_34, %c0_35] : memref<16x64xf32, #tpu.memory_space<vmem>>, vector<16x64xf32>
    %93 = arith.addf %91, %92 : vector<16x64xf32>
    %94 = tpu.transpose %93, [1, 0] : vector<16x64xf32> -> vector<64x16xf32>
    %c0_36 = arith.constant 0 : index
    %c0_37 = arith.constant 0 : index
    %c0_38 = arith.constant 0 : index
    %95 = vector.load %arg10[%c0_36, %c0_37, %c0_38] : memref<1x64x16xf32, #tpu.memory_space<vmem>>, vector<1x64x16xf32>
    %96 = vector.shape_cast %95 : vector<1x64x16xf32> to vector<64x16xf32>
    %97 = vector.shape_cast %94 : vector<64x16xf32> to vector<1x64x16xf32>
    tpu.vector_store %arg10[%c0_36, %c0_37, %c0_38], %97 {strides = array<i32>} : memref<1x64x16xf32, #tpu.memory_space<vmem>>, vector<1x64x16xf32>,
    return
  }
  func.func @transform_0(%arg0: i32) -> (i32, i32, i32) {
    %c0_i32 = arith.constant 0 : i32
    %c0_i32_0 = arith.constant 0 : i32
    %c0_i32_1 = arith.constant 0 : i32
    return %arg0, %c0_i32, %c0_i32_0 : i32, i32, i32
  }
  func.func @transform_1(%arg0: i32) -> (i32, i32) {
    %c0_i32 = arith.constant 0 : i32
    %c0_i32_0 = arith.constant 0 : i32
    %c0_i32_1 = arith.constant 0 : i32
    return %c0_i32, %c0_i32_0 : i32, i32
  }
  func.func @transform_2(%arg0: i32) -> (i32, i32) {
    %c0_i32 = arith.constant 0 : i32
    %c0_i32_0 = arith.constant 0 : i32
    %c0_i32_1 = arith.constant 0 : i32
    return %c0_i32, %c0_i32_0 : i32, i32
  }
  func.func @transform_3(%arg0: i32) -> (i32, i32) {
    %c0_i32 = arith.constant 0 : i32
    %c0_i32_0 = arith.constant 0 : i32
    %c0_i32_1 = arith.constant 0 : i32
    return %c0_i32, %c0_i32_0 : i32, i32
  }
  func.func @transform_4(%arg0: i32) -> (i32, i32) {
    %c0_i32 = arith.constant 0 : i32
    %c0_i32_0 = arith.constant 0 : i32
    %c0_i32_1 = arith.constant 0 : i32
    return %c0_i32, %c0_i32_0 : i32, i32
  }
  func.func @transform_5(%arg0: i32) -> (i32, i32) {
    %c0_i32 = arith.constant 0 : i32
    %c0_i32_0 = arith.constant 0 : i32
    %c0_i32_1 = arith.constant 0 : i32
    return %c0_i32, %c0_i32_0 : i32, i32
  }
  func.func @transform_6(%arg0: i32) -> (i32, i32) {
    %c0_i32 = arith.constant 0 : i32
    %c0_i32_0 = arith.constant 0 : i32
    %c0_i32_1 = arith.constant 0 : i32
    return %c0_i32, %c0_i32_0 : i32, i32
  }
  func.func @transform_7(%arg0: i32) -> (i32, i32) {
    %c0_i32 = arith.constant 0 : i32
    %c0_i32_0 = arith.constant 0 : i32
    %c0_i32_1 = arith.constant 0 : i32
    return %c0_i32, %c0_i32_0 : i32, i32
  }
  func.func @transform_8(%arg0: i32) -> (i32, i32) {
    %c0_i32 = arith.constant 0 : i32
    %c0_i32_0 = arith.constant 0 : i32
    %c0_i32_1 = arith.constant 0 : i32
    return %c0_i32, %c0_i32_0 : i32, i32
  }
  func.func @transform_9(%arg0: i32) -> (i32, i32, i32) {
    %c0_i32 = arith.constant 0 : i32
    %c0_i32_0 = arith.constant 0 : i32
    %c0_i32_1 = arith.constant 0 : i32
    return %arg0, %c0_i32, %c0_i32_0 : i32, i32, i32
  }
}

</mosaic_0001>

<bundles_post_ra>
// kernel: custom-call.1
= control target key start
LH: loop header
LB: loop body
LE: loop exit
PB: predicated region body
PF: predicated region fallthrough
CT: control target
= control target key end

     0   :  { %s51_s0 = inlined_call_operand.hbm [shape: c64[2,4,16,16], index: 0, kind: input, shape index: {}]   ;;  %s52_s1 = inlined_call_operand.vmem [shape: f32[2,4,16,16], index: 1, kind: output, shape index: {}]  }
   0x1   :  { %s2_s8 = scalar_lea.hbm %s51_s0, 2048 }
   0x2   :  { %3 = vsyncpa [#allocation0], 0  ;;  %s4_s11 = sshll.u32 %s52_s1, 4  ;;  %s5_s11 = int_to_ptr.vmem [resolvable:$true] %s4_s11 }
   0x3   :  { %s20_s12 = scalar_lea.vmem %s5_s11, 2048  ;;  %p25_p1 = scmp.lt.s32.totalorder %s5_s11, %s5_s11 }
   0x4   :  { %p21_p0 = scmp.ne.s32.totalorder %s5_s11, %s20_s12  ;;  %p26_p2 = scmp.lt.s32.totalorder %s20_s12, %s20_s12 }
   0x6   :  { %p27_p3 = por %p26_p2, %p25_p1 }
   0x8   :  { %p28_p4 = pnand %p27_p3, %p21_p0 }
   0xa   :  { %31 = shalt.err (!%p28_p4)  }
   0xb   :  { %7 = dma.hbm_to_vmem [thread:$0]  %s2_s8, 2048, %s5_s11, [#allocation0] }
   0xc   :  { %33 = dma.done.wait [#allocation0], 2048  }
   0xd   :  { %34 = vsyncadd [#allocation0], 4294965248 }
   0xe   :  { %9 = vsyncpa [#allocation0], 1 }

// kernel: custom-call
= control target key start
LH: loop header
LB: loop body
LE: loop exit
PB: predicated region body
PF: predicated region fallthrough
CT: control target
= control target key end

     0   :  { %2 = vsyncpa [#allocation0], 0  ;;  %s47_s0 = inlined_call_operand.hbm [shape: c64[2,4,16,16], index: 0, kind: input, shape index: {}]   ;;  %s48_s1 = inlined_call_operand.vmem [shape: f32[2,4,16,16], index: 1, kind: output, shape index: {}]  }
   0x1   :  { %s3_s8 = sshll.u32 %s48_s1, 4  ;;  %s4_s8 = int_to_ptr.vmem [resolvable:$true] %s3_s8 }
   0x2   :  { %s17_s9 = scalar_lea.vmem %s4_s8, 2048  ;;  %p22_p1 = scmp.lt.s32.totalorder %s4_s8, %s4_s8 }
   0x3   :  { %p18_p0 = scmp.ne.s32.totalorder %s4_s8, %s17_s9  ;;  %p23_p2 = scmp.lt.s32.totalorder %s17_s9, %s17_s9 }
   0x5   :  { %p24_p3 = por %p23_p2, %p22_p1 }
   0x7   :  { %p25_p4 = pnand %p24_p3, %p18_p0 }
   0x9   :  { %28 = shalt.err (!%p25_p4)  }
   0xa   :  { %6 = dma.hbm_to_vmem [thread:$0]  %s47_s0, 2048, %s4_s8, [#allocation0] }
   0xb   :  { %29 = dma.done.wait [#allocation0], 2048  }
   0xc   :  { %30 = vsyncadd [#allocation0], 4294965248 }
   0xd   :  { %8 = vsyncpa [#allocation0], 1 }

// kernel: custom-call.2
= control target key start
LH: loop header
LB: loop body
LE: loop exit
PB: predicated region body
PF: predicated region fallthrough
CT: control target
= control target key end

     0   :  { %2 = vsyncpa [#allocation0], 0  ;;  %s47_s0 = inlined_call_operand.hbm [shape: c64[4,16,16], index: 0, kind: input, shape index: {}]   ;;  %s48_s1 = inlined_call_operand.vmem [shape: f32[4,16,16], index: 1, kind: output, shape index: {}]  }
   0x1   :  { %s3_s8 = sshll.u32 %s48_s1, 4  ;;  %s4_s8 = int_to_ptr.vmem [resolvable:$true] %s3_s8 }
   0x2   :  { %s17_s9 = scalar_lea.vmem %s4_s8, 1024  ;;  %p22_p1 = scmp.lt.s32.totalorder %s4_s8, %s4_s8 }
   0x3   :  { %p18_p0 = scmp.ne.s32.totalorder %s4_s8, %s17_s9  ;;  %p23_p2 = scmp.lt.s32.totalorder %s17_s9, %s17_s9 }
   0x5   :  { %p24_p3 = por %p23_p2, %p22_p1 }
   0x7   :  { %p25_p4 = pnand %p24_p3, %p18_p0 }
   0x9   :  { %28 = shalt.err (!%p25_p4)  }
   0xa   :  { %6 = dma.hbm_to_vmem [thread:$0]  %s47_s0, 1024, %s4_s8, [#allocation0] }
   0xb   :  { %29 = dma.done.wait [#allocation0], 1024  }
   0xc   :  { %30 = vsyncadd [#allocation0], 4294966272 }
   0xd   :  { %8 = vsyncpa [#allocation0], 1 }

// kernel: custom-call.3
= control target key start
LH: loop header
LB: loop body
LE: loop exit
PB: predicated region body
PF: predicated region fallthrough
CT: control target
= control target key end

     0   :  { %s51_s0 = inlined_call_operand.hbm [shape: c64[4,16,16], index: 0, kind: input, shape index: {}]   ;;  %s52_s1 = inlined_call_operand.vmem [shape: f32[4,16,16], index: 1, kind: output, shape index: {}]  }
   0x1   :  { %s2_s8 = scalar_lea.hbm %s51_s0, 1024 }
   0x2   :  { %3 = vsyncpa [#allocation0], 0  ;;  %s4_s11 = sshll.u32 %s52_s1, 4  ;;  %s5_s11 = int_to_ptr.vmem [resolvable:$true] %s4_s11 }
   0x3   :  { %s20_s12 = scalar_lea.vmem %s5_s11, 1024  ;;  %p25_p1 = scmp.lt.s32.totalorder %s5_s11, %s5_s11 }
   0x4   :  { %p21_p0 = scmp.ne.s32.totalorder %s5_s11, %s20_s12  ;;  %p26_p2 = scmp.lt.s32.totalorder %s20_s12, %s20_s12 }
   0x6   :  { %p27_p3 = por %p26_p2, %p25_p1 }
   0x8   :  { %p28_p4 = pnand %p27_p3, %p21_p0 }
   0xa   :  { %31 = shalt.err (!%p28_p4)  }
   0xb   :  { %7 = dma.hbm_to_vmem [thread:$0]  %s2_s8, 1024, %s5_s11, [#allocation0] }
   0xc   :  { %33 = dma.done.wait [#allocation0], 1024  }
   0xd   :  { %34 = vsyncadd [#allocation0], 4294966272 }
   0xe   :  { %9 = vsyncpa [#allocation0], 1 }

// kernel: neg.3
= control target key start
LH: loop header
LB: loop body
LE: loop exit
PB: predicated region body
PF: predicated region fallthrough
CT: control target
= control target key end

     0   :  { %s40_s0 = inlined_call_operand.vmem [shape: f32[16,64], index: 0, kind: input, shape index: {}]   ;;  %s41_s1 = inlined_call_operand.vmem [shape: f32[16,64], index: 1, kind: output, shape index: {}]  }
   0x1   :  { %v2_v0 = vld [vmem:[%s40_s0] sm:$0xff]  ;;  %v16_v1 = vld [vmem:[%s40_s0 + $0x8] sm:$0xff] }
   0x2   :  { %v5_v2 = vxor.u32 2147483648, %v2_v0  ;;  %v12_v3 = vxor.u32 2147483648, %v16_v1 }
   0x4   :  { %7 = vst [vmem:[%s41_s1] sm:$0xff] %v5_v2  ;;  %17 = vst [vmem:[%s41_s1 + $0x8] sm:$0xff] %v12_v3 }

// kernel: custom-call.6
= control target key start
LH: loop header
LB: loop body
LE: loop exit
PB: predicated region body
PF: predicated region fallthrough
CT: control target
= control target key end

     0   :  { %2 = vsyncpa [#allocation0], 0  ;;  %s47_s0 = inlined_call_operand.hbm [shape: c64[32,4,4,4], index: 0, kind: input, shape index: {}]   ;;  %s48_s1 = inlined_call_operand.vmem [shape: f32[32,4,4,4], index: 1, kind: output, shape index: {}]  }
   0x1   :  { %s3_s8 = sshll.u32 %s48_s1, 4  ;;  %s4_s8 = int_to_ptr.vmem [resolvable:$true] %s3_s8 }
   0x2   :  { %s17_s9 = scalar_lea.vmem %s4_s8, 1024  ;;  %p22_p1 = scmp.lt.s32.totalorder %s4_s8, %s4_s8 }
   0x3   :  { %p18_p0 = scmp.ne.s32.totalorder %s4_s8, %s17_s9  ;;  %p23_p2 = scmp.lt.s32.totalorder %s17_s9, %s17_s9 }
   0x5   :  { %p24_p3 = por %p23_p2, %p22_p1 }
   0x7   :  { %p25_p4 = pnand %p24_p3, %p18_p0 }
   0x9   :  { %28 = shalt.err (!%p25_p4)  }
   0xa   :  { %6 = dma.hbm_to_vmem [thread:$0]  %s47_s0, 1024, %s4_s8, [#allocation0] }
   0xb   :  { %29 = dma.done.wait [#allocation0], 1024  }
   0xc   :  { %30 = vsyncadd [#allocation0], 4294966272 }
   0xd   :  { %8 = vsyncpa [#allocation0], 1 }

// kernel: custom-call.7
= control target key start
LH: loop header
LB: loop body
LE: loop exit
PB: predicated region body
PF: predicated region fallthrough
CT: control target
= control target key end

     0   :  { %s51_s0 = inlined_call_operand.hbm [shape: c64[32,4,4,4], index: 0, kind: input, shape index: {}]   ;;  %s52_s1 = inlined_call_operand.vmem [shape: f32[32,4,4,4], index: 1, kind: output, shape index: {}]  }
   0x1   :  { %s2_s8 = scalar_lea.hbm %s51_s0, 1024 }
   0x2   :  { %3 = vsyncpa [#allocation0], 0  ;;  %s4_s11 = sshll.u32 %s52_s1, 4  ;;  %s5_s11 = int_to_ptr.vmem [resolvable:$true] %s4_s11 }
   0x3   :  { %s20_s12 = scalar_lea.vmem %s5_s11, 1024  ;;  %p25_p1 = scmp.lt.s32.totalorder %s5_s11, %s5_s11 }
   0x4   :  { %p21_p0 = scmp.ne.s32.totalorder %s5_s11, %s20_s12  ;;  %p26_p2 = scmp.lt.s32.totalorder %s20_s12, %s20_s12 }
   0x6   :  { %p27_p3 = por %p26_p2, %p25_p1 }
   0x8   :  { %p28_p4 = pnand %p27_p3, %p21_p0 }
   0xa   :  { %31 = shalt.err (!%p28_p4)  }
   0xb   :  { %7 = dma.hbm_to_vmem [thread:$0]  %s2_s8, 1024, %s5_s11, [#allocation0] }
   0xc   :  { %33 = dma.done.wait [#allocation0], 1024  }
   0xd   :  { %34 = vsyncadd [#allocation0], 4294966272 }
   0xe   :  { %9 = vsyncpa [#allocation0], 1 }

// kernel: custom-call.9
= control target key start
LH: loop header
LB: loop body
LE: loop exit
PB: predicated region body
PF: predicated region fallthrough
CT: control target
= control target key end

     0   :  { %s51_s0 = inlined_call_operand.hbm [shape: c64[32], index: 0, kind: input, shape index: {}]   ;;  %s52_s1 = inlined_call_operand.vmem [shape: f32[32], index: 1, kind: output, shape index: {}]  }
   0x1   :  { %s2_s8 = scalar_lea.hbm %s51_s0, 16 }
   0x2   :  { %3 = vsyncpa [#allocation0], 0  ;;  %s4_s11 = sshll.u32 %s52_s1, 4  ;;  %s5_s11 = int_to_ptr.vmem [resolvable:$true] %s4_s11 }
   0x3   :  { %s20_s12 = scalar_lea.vmem %s5_s11, 16  ;;  %p25_p1 = scmp.lt.s32.totalorder %s5_s11, %s5_s11 }
   0x4   :  { %p21_p0 = scmp.ne.s32.totalorder %s5_s11, %s20_s12  ;;  %p26_p2 = scmp.lt.s32.totalorder %s20_s12, %s20_s12 }
   0x6   :  { %p27_p3 = por %p26_p2, %p25_p1 }
   0x8   :  { %p28_p4 = pnand %p27_p3, %p21_p0 }
   0xa   :  { %31 = shalt.err (!%p28_p4)  }
   0xb   :  { %7 = dma.hbm_to_vmem [thread:$0]  %s2_s8, 16, %s5_s11, [#allocation0] }
   0xc   :  { %33 = dma.done.wait [#allocation0], 16  }
   0xd   :  { %34 = vsyncadd [#allocation0], 4294967280 }
   0xe   :  { %9 = vsyncpa [#allocation0], 1 }

// kernel: custom-call.8
= control target key start
LH: loop header
LB: loop body
LE: loop exit
PB: predicated region body
PF: predicated region fallthrough
CT: control target
= control target key end

     0   :  { %2 = vsyncpa [#allocation0], 0  ;;  %s47_s0 = inlined_call_operand.hbm [shape: c64[32], index: 0, kind: input, shape index: {}]   ;;  %s48_s1 = inlined_call_operand.vmem [shape: f32[32], index: 1, kind: output, shape index: {}]  }
   0x1   :  { %s3_s8 = sshll.u32 %s48_s1, 4  ;;  %s4_s8 = int_to_ptr.vmem [resolvable:$true] %s3_s8 }
   0x2   :  { %s17_s9 = scalar_lea.vmem %s4_s8, 16  ;;  %p22_p1 = scmp.lt.s32.totalorder %s4_s8, %s4_s8 }
   0x3   :  { %p18_p0 = scmp.ne.s32.totalorder %s4_s8, %s17_s9  ;;  %p23_p2 = scmp.lt.s32.totalorder %s17_s9, %s17_s9 }
   0x5   :  { %p24_p3 = por %p23_p2, %p22_p1 }
   0x7   :  { %p25_p4 = pnand %p24_p3, %p18_p0 }
   0x9   :  { %28 = shalt.err (!%p25_p4)  }
   0xa   :  { %6 = dma.hbm_to_vmem [thread:$0]  %s47_s0, 16, %s4_s8, [#allocation0] }
   0xb   :  { %29 = dma.done.wait [#allocation0], 16  }
   0xc   :  { %30 = vsyncadd [#allocation0], 4294967280 }
   0xd   :  { %8 = vsyncpa [#allocation0], 1 }

// kernel: custom-call.10
= control target key start
LH: loop header
LB: loop body
LE: loop exit
PB: predicated region body
PF: predicated region fallthrough
CT: control target
= control target key end

     0   :  { %2 = vsyncpa [#allocation0], 0  ;;  %s47_s0 = inlined_call_operand.hbm [shape: c64[32,4,4], index: 0, kind: input, shape index: {}]   ;;  %s48_s1 = inlined_call_operand.vmem [shape: f32[32,4,4], index: 1, kind: output, shape index: {}]  }
   0x1   :  { %s3_s8 = sshll.u32 %s48_s1, 4  ;;  %s4_s8 = int_to_ptr.vmem [resolvable:$true] %s3_s8 }
   0x2   :  { %s17_s9 = scalar_lea.vmem %s4_s8, 256  ;;  %p22_p1 = scmp.lt.s32.totalorder %s4_s8, %s4_s8 }
   0x3   :  { %p18_p0 = scmp.ne.s32.totalorder %s4_s8, %s17_s9  ;;  %p23_p2 = scmp.lt.s32.totalorder %s17_s9, %s17_s9 }
   0x5   :  { %p24_p3 = por %p23_p2, %p22_p1 }
   0x7   :  { %p25_p4 = pnand %p24_p3, %p18_p0 }
   0x9   :  { %28 = shalt.err (!%p25_p4)  }
   0xa   :  { %6 = dma.hbm_to_vmem [thread:$0]  %s47_s0, 256, %s4_s8, [#allocation0] }
   0xb   :  { %29 = dma.done.wait [#allocation0], 256  }
   0xc   :  { %30 = vsyncadd [#allocation0], 4294967040 }
   0xd   :  { %8 = vsyncpa [#allocation0], 1 }

// kernel: custom-call.11
= control target key start
LH: loop header
LB: loop body
LE: loop exit
PB: predicated region body
PF: predicated region fallthrough
CT: control target
= control target key end

     0   :  { %s51_s0 = inlined_call_operand.hbm [shape: c64[32,4,4], index: 0, kind: input, shape index: {}]   ;;  %s52_s1 = inlined_call_operand.vmem [shape: f32[32,4,4], index: 1, kind: output, shape index: {}]  }
   0x1   :  { %s2_s8 = scalar_lea.hbm %s51_s0, 256 }
   0x2   :  { %3 = vsyncpa [#allocation0], 0  ;;  %s4_s11 = sshll.u32 %s52_s1, 4  ;;  %s5_s11 = int_to_ptr.vmem [resolvable:$true] %s4_s11 }
   0x3   :  { %s20_s12 = scalar_lea.vmem %s5_s11, 256  ;;  %p25_p1 = scmp.lt.s32.totalorder %s5_s11, %s5_s11 }
   0x4   :  { %p21_p0 = scmp.ne.s32.totalorder %s5_s11, %s20_s12  ;;  %p26_p2 = scmp.lt.s32.totalorder %s20_s12, %s20_s12 }
   0x6   :  { %p27_p3 = por %p26_p2, %p25_p1 }
   0x8   :  { %p28_p4 = pnand %p27_p3, %p21_p0 }
   0xa   :  { %31 = shalt.err (!%p28_p4)  }
   0xb   :  { %7 = dma.hbm_to_vmem [thread:$0]  %s2_s8, 256, %s5_s11, [#allocation0] }
   0xc   :  { %33 = dma.done.wait [#allocation0], 256  }
   0xd   :  { %34 = vsyncadd [#allocation0], 4294967040 }
   0xe   :  { %9 = vsyncpa [#allocation0], 1 }

// kernel: neg.5
= control target key start
LH: loop header
LB: loop body
LE: loop exit
PB: predicated region body
PF: predicated region fallthrough
CT: control target
= control target key end

     0   :  { %s40_s0 = inlined_call_operand.vmem [shape: f32[16,32], index: 0, kind: input, shape index: {}]   ;;  %s41_s1 = inlined_call_operand.vmem [shape: f32[16,32], index: 1, kind: output, shape index: {}]  }
   0x1   :  { %v2_v0 = vld [vmem:[%s40_s0] sm:$0xff]  ;;  %v16_v1 = vld [vmem:[%s40_s0 + $0x8] sm:$0xff] }
   0x2   :  { %v5_v2 = vxor.u32 2147483648, %v2_v0  ;;  %v12_v3 = vxor.u32 2147483648, %v16_v1 }
   0x4   :  { %7 = vst [vmem:[%s41_s1] sm:$0xff] %v5_v2  ;;  %17 = vst [vmem:[%s41_s1 + $0x8] sm:$0xff] %v12_v3 }

// kernel: custom-call.13
= control target key start
LH: loop header
LB: loop body
LE: loop exit
PB: predicated region body
PF: predicated region fallthrough
CT: control target
= control target key end

     0   :  { %s217_s0 = inlined_call_operand.vmem [shape: c64[32,4,4], index: 0, kind: input, shape index: {}]   ;;  %s218_s1 = inlined_call_operand.vmem [shape: f32[32,4,4], index: 1, kind: output, shape index: {}]  }
   0x1   :  { %v80_v0 = vld [vmem:[%s217_s0 + $0x80] sm:$0xff]  ;;  %v81_v1 = vld [vmem:[%s217_s0 + $0x88] sm:$0xff]  ;;  %v83_v2 = vld [vmem:[%s217_s0 + $0x90] sm:$0xff] }
   0x2   :  { %4 = vst [vmem:[%s218_s1] sm:$0xff] %v80_v0  ;;  %82 = vst [vmem:[%s218_s1 + $0x8] sm:$0xff] %v81_v1  ;;  %v85_v3 = vld [vmem:[%s217_s0 + $0x98] sm:$0xff]  ;;  %v87_v4 = vld [vmem:[%s217_s0 + $0xa0] sm:$0xff] }
   0x3   :  { %84 = vst [vmem:[%s218_s1 + $0x10] sm:$0xff] %v83_v2  ;;  %v89_v5 = vld [vmem:[%s217_s0 + $0xa8] sm:$0xff]  ;;  %86 = vst [vmem:[%s218_s1 + $0x18] sm:$0xff] %v85_v3  ;;  %v91_v6 = vld [vmem:[%s217_s0 + $0xb0] sm:$0xff] }
   0x4   :  { %88 = vst [vmem:[%s218_s1 + $0x20] sm:$0xff] %v87_v4  ;;  %90 = vst [vmem:[%s218_s1 + $0x28] sm:$0xff] %v89_v5  ;;  %v93_v7 = vld [vmem:[%s217_s0 + $0xb8] sm:$0xff]  ;;  %v95_v8 = vld [vmem:[%s217_s0 + $0xc0] sm:$0xff] }
   0x5   :  { %92 = vst [vmem:[%s218_s1 + $0x30] sm:$0xff] %v91_v6  ;;  %94 = vst [vmem:[%s218_s1 + $0x38] sm:$0xff] %v93_v7  ;;  %v97_v9 = vld [vmem:[%s217_s0 + $0xc8] sm:$0xff]  ;;  %v99_v10 = vld [vmem:[%s217_s0 + $0xd0] sm:$0xff] }
   0x6   :  { %96 = vst [vmem:[%s218_s1 + $0x40] sm:$0xff] %v95_v8  ;;  %v101_v11 = vld [vmem:[%s217_s0 + $0xd8] sm:$0xff]  ;;  %98 = vst [vmem:[%s218_s1 + $0x48] sm:$0xff] %v97_v9  ;;  %v103_v12 = vld [vmem:[%s217_s0 + $0xe0] sm:$0xff] }
   0x7   :  { %100 = vst [vmem:[%s218_s1 + $0x50] sm:$0xff] %v99_v10  ;;  %102 = vst [vmem:[%s218_s1 + $0x58] sm:$0xff] %v101_v11  ;;  %v105_v13 = vld [vmem:[%s217_s0 + $0xe8] sm:$0xff]  ;;  %v107_v14 = vld [vmem:[%s217_s0 + $0xf0] sm:$0xff] }
   0x8   :  { %104 = vst [vmem:[%s218_s1 + $0x60] sm:$0xff] %v103_v12  ;;  %106 = vst [vmem:[%s218_s1 + $0x68] sm:$0xff] %v105_v13  ;;  %v109_v15 = vld [vmem:[%s217_s0 + $0xf8] sm:$0xff] }
   0x9   :  { %108 = vst [vmem:[%s218_s1 + $0x70] sm:$0xff] %v107_v14  ;;  %110 = vst [vmem:[%s218_s1 + $0x78] sm:$0xff] %v109_v15 }

// kernel: custom-call.12
= control target key start
LH: loop header
LB: loop body
LE: loop exit
PB: predicated region body
PF: predicated region fallthrough
CT: control target
= control target key end

     0   :  { %s200_s0 = inlined_call_operand.vmem [shape: c64[32,4,4], index: 0, kind: input, shape index: {}]   ;;  %s201_s1 = inlined_call_operand.vmem [shape: f32[32,4,4], index: 1, kind: output, shape index: {}]  }
   0x1   :  { %v2_v0 = vld [vmem:[%s200_s0] sm:$0xff]  ;;  %v64_v1 = vld [vmem:[%s200_s0 + $0x8] sm:$0xff]  ;;  %v66_v2 = vld [vmem:[%s200_s0 + $0x10] sm:$0xff] }
   0x2   :  { %3 = vst [vmem:[%s201_s1] sm:$0xff] %v2_v0  ;;  %65 = vst [vmem:[%s201_s1 + $0x8] sm:$0xff] %v64_v1  ;;  %v68_v3 = vld [vmem:[%s200_s0 + $0x18] sm:$0xff]  ;;  %v70_v4 = vld [vmem:[%s200_s0 + $0x20] sm:$0xff] }
   0x3   :  { %67 = vst [vmem:[%s201_s1 + $0x10] sm:$0xff] %v66_v2  ;;  %v72_v5 = vld [vmem:[%s200_s0 + $0x28] sm:$0xff]  ;;  %69 = vst [vmem:[%s201_s1 + $0x18] sm:$0xff] %v68_v3  ;;  %v74_v6 = vld [vmem:[%s200_s0 + $0x30] sm:$0xff] }
   0x4   :  { %71 = vst [vmem:[%s201_s1 + $0x20] sm:$0xff] %v70_v4  ;;  %73 = vst [vmem:[%s201_s1 + $0x28] sm:$0xff] %v72_v5  ;;  %v76_v7 = vld [vmem:[%s200_s0 + $0x38] sm:$0xff]  ;;  %v78_v8 = vld [vmem:[%s200_s0 + $0x40] sm:$0xff] }
   0x5   :  { %75 = vst [vmem:[%s201_s1 + $0x30] sm:$0xff] %v74_v6  ;;  %77 = vst [vmem:[%s201_s1 + $0x38] sm:$0xff] %v76_v7  ;;  %v80_v9 = vld [vmem:[%s200_s0 + $0x48] sm:$0xff]  ;;  %v82_v10 = vld [vmem:[%s200_s0 + $0x50] sm:$0xff] }
   0x6   :  { %79 = vst [vmem:[%s201_s1 + $0x40] sm:$0xff] %v78_v8  ;;  %v84_v11 = vld [vmem:[%s200_s0 + $0x58] sm:$0xff]  ;;  %81 = vst [vmem:[%s201_s1 + $0x48] sm:$0xff] %v80_v9  ;;  %v86_v12 = vld [vmem:[%s200_s0 + $0x60] sm:$0xff] }
   0x7   :  { %83 = vst [vmem:[%s201_s1 + $0x50] sm:$0xff] %v82_v10  ;;  %85 = vst [vmem:[%s201_s1 + $0x58] sm:$0xff] %v84_v11  ;;  %v88_v13 = vld [vmem:[%s200_s0 + $0x68] sm:$0xff]  ;;  %v90_v14 = vld [vmem:[%s200_s0 + $0x70] sm:$0xff] }
   0x8   :  { %87 = vst [vmem:[%s201_s1 + $0x60] sm:$0xff] %v86_v12  ;;  %89 = vst [vmem:[%s201_s1 + $0x68] sm:$0xff] %v88_v13  ;;  %v92_v15 = vld [vmem:[%s200_s0 + $0x78] sm:$0xff] }
   0x9   :  { %91 = vst [vmem:[%s201_s1 + $0x70] sm:$0xff] %v90_v14  ;;  %93 = vst [vmem:[%s201_s1 + $0x78] sm:$0xff] %v92_v15 }

// kernel: custom-call.14
= control target key start
LH: loop header
LB: loop body
LE: loop exit
PB: predicated region body
PF: predicated region fallthrough
CT: control target
= control target key end

     0   :  { %s92_s0 = inlined_call_operand.vmem [shape: f32[2,32,4,4], index: 0, kind: input, shape index: {}]   ;;  %s93_s1 = inlined_call_operand.vmem [shape: f32[2,32,4,4], index: 1, kind: input, shape index: {}]   ;;  %s94_s2 = inlined_call_operand.hbm [shape: c64[2,32,4,4], index: 2, kind: output, shape index: {}]  }
   0x1   :  { %s3_s11 = scalar_lea.hbm %s94_s2, 512 }
   0x2   :  { %4 = vsyncpa [#allocation0], 0  ;;  %s5_s14 = sshll.u32 %s92_s0, 4  ;;  %s6_s14 = int_to_ptr.vmem [resolvable:$true] %s5_s14 }
   0x3   :  { %s18_s15 = scalar_lea.vmem %s6_s14, 512  ;;  %p23_p1 = scmp.lt.s32.totalorder %s6_s14, %s6_s14 }
   0x4   :  { %p19_p0 = scmp.ne.s32.totalorder %s6_s14, %s18_s15  ;;  %p24_p2 = scmp.lt.s32.totalorder %s18_s15, %s18_s15 }
   0x6   :  { %p25_p3 = por %p24_p2, %p23_p1 }
   0x8   :  { %p26_p4 = pnand %p25_p3, %p19_p0 }
   0xa   :  { %29 = shalt.err (!%p26_p4)  }
   0xb   :  { %8 = dma.vmem_to_hbm [thread:$0]  %s6_s14, 512, %s94_s2, [#allocation0] }
   0xc   :  { %61 = dma.done.wait [#allocation0], 512  }
   0xd   :  { %62 = vsyncadd [#allocation0], 4294966784 }
   0xe   :  { %10 = vsyncpa [#allocation0], 1 }
   0xf   :  { %11 = vsyncpa [#allocation1], 0  ;;  %s12_s0 = sshll.u32 %s93_s1, 4  ;;  %s13_s0 = int_to_ptr.vmem [resolvable:$true] %s12_s0 }
  0x10   :  { %s38_s20 = scalar_lea.vmem %s13_s0, 512  ;;  %p43_p6 = scmp.lt.s32.totalorder %s13_s0, %s13_s0 }
  0x11   :  { %p39_p5 = scmp.ne.s32.totalorder %s13_s0, %s38_s20  ;;  %p44_p7 = scmp.lt.s32.totalorder %s38_s20, %s38_s20 }
  0x13   :  { %p45_p8 = por %p44_p7, %p43_p6 }
  0x15   :  { %p46_p9 = pnand %p45_p8, %p39_p5 }
  0x17   :  { %49 = shalt.err (!%p46_p9)  }
  0x18   :  { %15 = dma.vmem_to_hbm [thread:$0]  %s13_s0, 512, %s3_s11, [#allocation1] }
  0x19   :  { %63 = dma.done.wait [#allocation1], 512  }
  0x1a   :  { %64 = vsyncadd [#allocation1], 4294966784 }
  0x1b   :  { %17 = vsyncpa [#allocation1], 1 }

// kernel: patch_embedder_forward.1
= control target key start
LH: loop header
LB: loop body
LE: loop exit
PB: predicated region body
PF: predicated region fallthrough
CT: control target
= control target key end

     0   :  { %s839_s30 = smov 0   ;;  %s951_s0 = inlined_call_operand.vmem [shape: f32[2,16,128], index: 0, kind: input, shape index: {}]   ;;  %s952_s1 = inlined_call_operand.vmem [shape: f32[16,128], index: 1, kind: input, shape index: {}]   ;;  %s953_s2 = inlined_call_operand.vmem [shape: f32[16,128], index: 2, kind: input, shape index: {}]   ;;  %s954_s3 = inlined_call_operand.vmem [shape: f32[16,128], index: 3, kind: input, shape index: {}]   ;;  %s955_s4 = inlined_call_operand.vmem [shape: bf16[128,64], index: 4, kind: input, shape index: {}]   ;;  %s956_s5 = inlined_call_operand.vmem [shape: f32[1,64], index: 5, kind: input, shape index: {}]   ;;  %s957_s6 = inlined_call_operand.vmem [shape: f32[16,64], index: 6, kind: input, shape index: {}]   ;;  %s958_s7 = inlined_call_operand.vmem [shape: f32[16,64], index: 7, kind: input, shape index: {}]   ;;  %s959_s8 = inlined_call_operand.vmem [shape: f32[16,64], index: 8, kind: input, shape index: {}]   ;;  %s960_s9 = inlined_call_operand.vmem [shape: f32[2,64,16], index: 9, kind: output, shape index: {}]  }
   0x1 LB: > { %s696_s10 = sadd.s32 4294967295, %s782_s30   ;;  %p700_p0 = scmp.ge.s32.totalorder %s782_s30, 1  ;;  %s782_s30 = sphi %s839_s30, %s19_s30  }
   0x2   : > { %p287_p1 = scmp.lt.s32.totalorder %s782_s30, 3 }
   0x4   : > { %p288_p2 = pnand %p700_p0, %p287_p1 }
   0x5   : > { %p323_p3 = scmp.lt.s32.totalorder (!%p288_p2), %s696_s10, 1  ;;  %s784_s15 = smov (!%p288_p2), 64  }
   0x6   : > { %291 = sbr.rel (%p288_p2) target bundleno = 1849 (0x739), region = 56  ;;  %s787_s29 = smov (!%p288_p2), 96  }
   0xb   : > { %s962_s10 = smov (!%p323_p3, %s696_s10), 1  ;;  %vm343_vm0 = vcmask 523264   ;;  %v356_v12 = vlaneseq  ;;  %v764_v24 = vld [vmem:[%s955_s4 + $0x38] sm:$0xff]   ;;  %v785_v25 = vmov 0.0   ;;  %v765_v26 = vld [vmem:[%s955_s4 + $0x30] sm:$0xff]   ;;  %v766_v27 = vld [vmem:[%s955_s4 + $0x28] sm:$0xff]  }
   0xc   : > { %s716_s11 = sshll.u32 %s962_s10, 4  ;;  %727 = vmatprep.subr.bf16.mxu0 %v785_v25  ;;  %v767_v28 = vld [vmem:[%s955_s4 + $0x20] sm:$0xff]   ;;  %v768_v29 = vld [vmem:[%s955_s4 + $0x18] sm:$0xff]   ;;  %v769_v40 = vld [vmem:[%s955_s4 + $0x10] sm:$0xff]   ;;  %vm786_vm2 = vmmov 0   ;;  %vm520_vm3 = vcmask 261120  }
   0xd   : > { %s327_s14 = scalar_lea.vmem %s951_s0, %s716_s11  ;;  %v856_v13 = vand.u32 127, %v356_v12  ;;  %728 = vmatpush3.bf16.msra.mxu0 %v764_v24  ;;  %v770_v41 = vld [vmem:[%s955_s4 + $0x8] sm:$0xff]   ;;  %v771_v42 = vld [vmem:[%s955_s4] sm:$0xff]   ;;  %743 = vmatprep.mubr.msk.bf16.mxu0 %vm786_vm2, %v785_v25  ;;  %vm561_vm5 = vcmask 1048064   ;;  %s717_s25 = sshll.u32 %s962_s10, 6  ;;  %vm632_vm6 = vcmask 130048  }
   0xe   : > { %v334_v0 = vld [vmem:[%s327_s14] sm:$0xff]  ;;  %v335_v1 = vld [vmem:[%s327_s14 + $0x8] sm:$0xff]  ;;  %729 = vmatprep.subr.bf16.mxu0 %v785_v25  ;;  %s788_s14 = smov 32   ;;  %s332_s28 = scalar_lea.vmem %s960_s9, %s717_s25 }
   0xf   : > { %v336_v2 = vadd.f32 %v335_v1, %v334_v0  ;;  %vm358_vm1 = vcmp.lt.s32.totalorder %v856_v13, 64  ;;  %v388_v46 = vld [vmem:[%s953_s2] sm:$0xff]  ;;  %v381_v50 = vld [vmem:[%s952_s1 + $0x8] sm:$0xff]  ;;  %vm533_vm4 = vcmp.lt.s32.totalorder %v856_v13, 32 }
  0x10   : > { %v380_v47 = vld [vmem:[%s952_s1] sm:$0xff]  ;;  %v389_v51 = vld [vmem:[%s953_s2 + $0x8] sm:$0xff] }
  0x11   : > { %v337_v3 = vrot.slane %v336_v2, 4  ;;  %730 = vmatpush3.bf16.msra.mxu0 %v765_v26  ;;  %v394_v57 = vld [vmem:[%s954_s3] sm:$0xff]  ;;  %v395_v58 = vld [vmem:[%s954_s3 + $0x8] sm:$0xff] }
  0x12   : > { %731 = vmatprep.subr.bf16.mxu0 %v785_v25  ;;  %v705_v63 = vld [vmem:[%s956_s5] ss:$0 sm:$0xff] }
  0x13   : > { %v338_v4 = vadd.f32 %v337_v3, %v336_v2 }
  0x15   : > { %v339_v5 = vrot.slane %v338_v4, 2  ;;  %732 = vmatpush3.bf16.msra.mxu0 %v766_v27 }
  0x16   : > { %733 = vmatprep.subr.bf16.mxu0 %v785_v25 }
  0x17   : > { %v340_v6 = vadd.f32 %v339_v5, %v338_v4 }
  0x19   : > { %v341_v7 = vrot.slane %v340_v6, 1  ;;  %734 = vmatpush3.bf16.msra.mxu0 %v767_v28 }
  0x1a   : > { %735 = vmatprep.subr.bf16.mxu0 %v785_v25 }
  0x1b   : > { %v342_v8 = vadd.f32 %v341_v7, %v340_v6 }
  0x1d   : > { %349 = vrot.lane.b32.xlu0 %v342_v8, %s784_s15  ;;  %v344_v9 = vsel %vm343_vm0, %v342_v8, 0.0  ;;  %736 = vmatpush3.bf16.msra.mxu0 %v768_v29 }
  0x1e   : > { %737 = vmatprep.subr.bf16.mxu0 %v785_v25 }
  0x21   : > { %738 = vmatpush3.bf16.msra.mxu0 %v769_v40  ;;  %v574_v40 = vld [vmem:[%s958_s7] sm:$0xff] }
  0x22   : > { %739 = vmatprep.subr.bf16.mxu0 %v785_v25 }
  0x25   : > { %740 = vmatpush3.bf16.msra.mxu0 %v770_v41 }
  0x26   : > { %741 = vmatprep.subr.bf16.mxu0 %v785_v25 }
  0x29   : > { %742 = vmatpush3.bf16.msra.mxu0 %v771_v42 }
  0x3c   : > { %345 = vadd.xlane.f32.xlu0 %v344_v9 }
  0x8f   : > { %v350_v10 = vpop.permute.xlu0 %349 }
  0x90   : > { %v352_v11 = vsel %vm343_vm0, %v350_v10, 0.0 }
  0x91   : > { %353 = vadd.xlane.f32.xlu1 %v352_v11 }
  0xc5   : > { %v346_v14 = vpop.xlane.xlu0 %345 }
  0xc6   : > { %v347_v15 = vmul.f32 0.0009765625, %v346_v14 }
 0x11a   : > { %v354_v16 = vpop.xlane.xlu1 %353 }
 0x11b   : > { %v355_v17 = vmul.f32 0.0009765625, %v354_v16 }
 0x11d   : > { %v359_v18 = vsel %vm358_vm1, %v347_v15, %v355_v17 }
 0x11e   : > { %v360_v19 = vsub.f32 %v334_v0, %v359_v18  ;;  %v361_v20 = vsub.f32 %v335_v1, %v359_v18 }
 0x120   : > { %v362_v21 = vmul.f32 %v360_v19, %v360_v19  ;;  %v363_v22 = vmul.f32 %v361_v20, %v361_v20 }
 0x122   : > { %v364_v23 = vadd.f32 %v363_v22, %v362_v21 }
 0x124   : > { %365 = vadd.xlane.f32.xlu1 %v364_v23 }
 0x1ad   : > { %v366_v30 = vpop.xlane.xlu1 %365 }
 0x1ae   : > { %v367_v31 = vrot.slane %v366_v30, 4 }
 0x1b0   : > { %v368_v32 = vadd.f32 %v367_v31, %v366_v30 }
 0x1b2   : > { %v369_v33 = vrot.slane %v368_v32, 2 }
 0x1b4   : > { %v370_v34 = vadd.f32 %v369_v33, %v368_v32 }
 0x1b6   : > { %v371_v35 = vrot.slane %v370_v34, 1 }
 0x1b8   : > { %v372_v36 = vadd.f32 %v371_v35, %v370_v34 }
 0x1ba   : > { %747 = vpush %v372_v36 }
 0x1eb   : > { %s748_s26 = spop %747 }
 0x1ec   : > { %v374_v37 = vstv %s748_s26 }
 0x1ed   : > { %v375_v38 = vmul.f32 0.0009765625, %v374_v37 }
 0x1ef   : > { %v376_v39 = vadd.f32 1e-05, %v375_v38 }
 0x1f1   : > { %772 = vrsqrt.f32 %v376_v39 }
 0x1fe   : > { %v773_v43 = vpop.eup %772 }
 0x1ff   : > { %v378_v44 = vmul.f32 %v773_v43, %v360_v19  ;;  %v379_v45 = vmul.f32 %v773_v43, %v361_v20 }
 0x201   : > { %384 = vrot.lane.b32.xlu1 %v378_v44, %s784_s15  ;;  %v382_v52 = vmul.f32 %v380_v47, %v378_v44  ;;  %v383_v55 = vmul.f32 %v381_v50, %v379_v45 }
 0x205   : > { %386 = vrot.lane.b32.xlu1 %v379_v45, %s784_s15 }
 0x273   : > { %v385_v48 = vpop.permute.xlu1 %384 }
 0x274   : > { %v390_v49 = vmul.f32 %v388_v46, %v385_v48  ;;  %v575_v48 = vld [vmem:[%s958_s7 + $0x8] sm:$0xff] }
 0x276   : > { %v392_v54 = vadd.f32 %v390_v49, %v382_v52 }
 0x277   : > { %v387_v53 = vpop.permute.xlu1 %386 }
 0x278   : > { %v391_v56 = vmul.f32 %v389_v51, %v387_v53  ;;  %v396_v60 = vadd.f32 %v394_v57, %v392_v54  ;;  %v557_v57 = vld [vmem:[%s957_s6] sm:$0xff] }
 0x27a   : > { %v393_v59 = vadd.f32 %v391_v56, %v383_v55 }
 0x27c   : > { %v397_v61 = vadd.f32 %v395_v58, %v393_v59 }
 0x27e   : > { %v398_v62 = vpack.c.bf16 %v397_v61, %v396_v60  ;;  %v596_v60 = vld [vmem:[%s959_s8] sm:$0xff] }
 0x280   : > { %744 = vmatmul.mubr.bf16.vlgmr.msra.gmra.mxu0 %v398_v62 }
 0x340   : > { %v504_v0 = vpop.f32.mrf.mxu0 }
 0x341   : > { %v505_v2 = vadd.f32 %v705_v63, %v504_v0 }
 0x342   : > { %v745_v1 = vpop.f32.mrf.mxu0 }
 0x343   : > { %v511_v6 = vsel %vm343_vm0, %v505_v2, 0.0  ;;  %v597_v1 = vld [vmem:[%s959_s8 + $0x8] sm:$0xff] }
 0x344   : > { %v507_v3 = vpop.f32.mrf.mxu0 }
 0x345   : > { %v508_v4 = vadd.f32 %v705_v63, %v507_v3  ;;  %v558_v63 = vld [vmem:[%s957_s6 + $0x8] sm:$0xff] }
 0x346   : > { %v746_v5 = vpop.f32.mrf.mxu0 }
 0x347   : > { %v512_v7 = vsel %vm343_vm0, %v508_v4, 0.0 }
 0x348   : > { %v513_v8 = vadd.f32 %v512_v7, %v511_v6 }
 0x34a   : > { %v514_v9 = vrot.slane %v513_v8, 4 }
 0x34c   : > { %v515_v10 = vadd.f32 %v514_v9, %v513_v8 }
 0x34e   : > { %v516_v11 = vrot.slane %v515_v10, 2 }
 0x350   : > { %v517_v12 = vadd.f32 %v516_v11, %v515_v10 }
 0x352   : > { %v518_v14 = vrot.slane %v517_v12, 1 }
 0x354   : > { %v519_v15 = vadd.f32 %v518_v14, %v517_v12 }
 0x356   : > { %526 = vrot.lane.b32.xlu1 %v519_v15, %s787_s29  ;;  %v521_v16 = vsel %vm520_vm3, %v519_v15, 0.0 }
 0x37a   : > { %522 = vadd.xlane.f32.xlu1 %v521_v16 }
 0x38b   : > { %578 = vrot.lane.b32.xlu1 %v574_v40, %s788_s14 }
 0x3c8   : > { %v527_v17 = vpop.permute.xlu1 %526 }
 0x3c9   : > { %v529_v18 = vsel %vm520_vm3, %v527_v17, 0.0 }
 0x3ca   : > { %530 = vadd.xlane.f32.xlu0 %v529_v18 }
 0x403   : > { %v523_v19 = vpop.xlane.xlu1 %522 }
 0x404   : > { %v524_v21 = vmul.f32 0.001953125, %v523_v19 }
 0x407   : > { %v579_v49 = vpop.permute.xlu1 %578 }
 0x453   : > { %v531_v20 = vpop.xlane.xlu0 %530 }
 0x454   : > { %v532_v22 = vmul.f32 0.001953125, %v531_v20 }
 0x456   : > { %v534_v23 = vsel %vm533_vm4, %v524_v21, %v532_v22 }
 0x457   : > { %v535_v24 = vsub.f32 %v505_v2, %v534_v23  ;;  %v536_v25 = vsub.f32 %v508_v4, %v534_v23 }
 0x459   : > { %v537_v26 = vmul.f32 %v535_v24, %v535_v24  ;;  %v538_v27 = vmul.f32 %v536_v25, %v536_v25 }
 0x45b   : > { %v539_v28 = vsel %vm343_vm0, %v537_v26, 0.0  ;;  %v540_v29 = vsel %vm343_vm0, %v538_v27, 0.0 }
 0x45c   : > { %v541_v30 = vadd.f32 %v540_v29, %v539_v28 }
 0x45e   : > { %542 = vadd.xlane.f32.xlu0 %v541_v30 }
 0x4e7   : > { %v543_v31 = vpop.xlane.xlu0 %542 }
 0x4e8   : > { %v544_v32 = vrot.slane %v543_v31, 4 }
 0x4ea   : > { %v545_v33 = vadd.f32 %v544_v32, %v543_v31 }
 0x4ec   : > { %v546_v34 = vrot.slane %v545_v33, 2 }
 0x4ee   : > { %v547_v35 = vadd.f32 %v546_v34, %v545_v33 }
 0x4f0   : > { %v548_v13 = vrot.slane %v547_v35, 1 }
 0x4f2   : > { %v549_v36 = vadd.f32 %v548_v13, %v547_v35 }
 0x4f4   : > { %749 = vpush %v549_v36 }
 0x525   : > { %s750_s11 = spop %749 }
 0x526   : > { %v551_v37 = vstv %s750_s11 }
 0x527   : > { %v552_v38 = vmul.f32 0.001953125, %v551_v37 }
 0x529   : > { %v553_v39 = vadd.f32 1e-05, %v552_v38 }
 0x52b   : > { %774 = vrsqrt.f32 %v553_v39 }
 0x538   : > { %v775_v41 = vpop.eup %774 }
 0x539   : > { %v555_v42 = vmul.f32 %v775_v41, %v535_v24  ;;  %v556_v43 = vmul.f32 %v775_v41, %v536_v25 }
 0x53b   : > { %562 = vrot.lane.b32.xlu0 %v555_v42, %s784_s15  ;;  %v559_v58 = vmul.f32 %v557_v57, %v555_v42  ;;  %v560_v0 = vmul.f32 %v558_v63, %v556_v43 }
 0x53f   : > { %565 = vrot.lane.b32.xlu0 %v556_v43, %s784_s15 }
 0x5ad   : > { %v563_v44 = vpop.permute.xlu0 %562 }
 0x5ae   : > { %v564_v45 = vsel %vm561_vm5, %v563_v44, %v555_v42 }
 0x5af   : > { %568 = vrot.lane.b32.xlu0 %v564_v45, %s784_s15 }
 0x5b1   : > { %v566_v46 = vpop.permute.xlu0 %565 }
 0x5b2   : > { %v567_v47 = vsel %vm561_vm5, %v566_v46, %v556_v43 }
 0x5b3   : > { %570 = vrot.lane.b32.xlu0 %v567_v47, %s784_s15 }
 0x5b7   : > { %580 = vrot.lane.b32.xlu0 %v575_v48, %s788_s14 }
 0x621   : > { %v569_v50 = vpop.permute.xlu0 %568 }
 0x622   : > { %v572_v51 = vsel %vm561_vm5, %v569_v50, %v555_v42 }
 0x623   : > { %v584_v52 = vmul.f32 %v579_v49, %v572_v51 }
 0x625   : > { %v571_v53 = vpop.permute.xlu0 %570  ;;  %588 = vrot.lane.b32.xlu0 %v584_v52, %s787_s29 }
 0x626   : > { %v573_v54 = vsel %vm561_vm5, %v571_v53, %v556_v43 }
 0x629   : > { %v581_v55 = vpop.permute.xlu0 %580 }
 0x62a   : > { %v585_v56 = vmul.f32 %v581_v55, %v573_v54 }
 0x62c   : > { %590 = vrot.lane.b32.xlu0 %v585_v56, %s787_s29 }
 0x697   : > { %v589_v59 = vpop.permute.xlu0 %588 }
 0x698   : > { %v594_v61 = vadd.f32 %v589_v59, %v559_v58 }
 0x69a   : > { %v598_v62 = vadd.f32 %v596_v60, %v594_v61 }
 0x69c   : > { %600 = vxpose.xlu1.b32.start [1/2] (short) (narrow) %v598_v62, 64 }
 0x69e   : > { %v591_v2 = vpop.permute.xlu0 %590 }
 0x69f   : > { %v595_v3 = vadd.f32 %v591_v2, %v560_v0 }
 0x6a1   : > { %v599_v4 = vadd.f32 %v597_v1, %v595_v3 }
 0x6a3   : > { %601 = vxpose.xlu1.b32.end [2/2] (short) (narrow) %v599_v4, 64 }
 0x71b   : > { %v616_v5 = vpop.trf.xlu1 }
 0x71c   : > { %633 = vst.msk [vmem:[%s332_s28] sm:$0xff] %vm632_vm6, %v616_v5 }
 0x71f   : > { %v617_v6 = vpop.trf.xlu1 }
 0x720   : > { %634 = vst.msk [vmem:[%s332_s28 + $0x8] sm:$0xff] %vm632_vm6, %v617_v6 }
 0x723   : > { %v618_v7 = vpop.trf.xlu1 }
 0x724   : > { %635 = vst.msk [vmem:[%s332_s28 + $0x10] sm:$0xff] %vm632_vm6, %v618_v7 }
 0x727   : > { %v619_v8 = vpop.trf.xlu1 }
 0x728   : > { %636 = vst.msk [vmem:[%s332_s28 + $0x18] sm:$0xff] %vm632_vm6, %v619_v8 }
 0x72b   : > { %v620_v9 = vpop.trf.xlu1 }
 0x72c   : > { %637 = vst.msk [vmem:[%s332_s28 + $0x20] sm:$0xff] %vm632_vm6, %v620_v9 }
 0x72f   : > { %v621_v10 = vpop.trf.xlu1 }
 0x730   : > { %638 = vst.msk [vmem:[%s332_s28 + $0x28] sm:$0xff] %vm632_vm6, %v621_v10 }
 0x733   : > { %v622_v11 = vpop.trf.xlu1 }
 0x734   : > { %639 = vst.msk [vmem:[%s332_s28 + $0x30] sm:$0xff] %vm632_vm6, %v622_v11 }
 0x737   : > { %v623_v12 = vpop.trf.xlu1 }
 0x738   : > { %640 = vst.msk [vmem:[%s332_s28 + $0x38] sm:$0xff] %vm632_vm6, %v623_v12 }
 0x739 PF: > { %s19_s30 = sadd.s32 1, %s782_s30  }
 0x73a   : > { %p16_p4 = scmp.ge.s32.totalorder %s19_s30, 4  }
 0x73c   :  { %18 = sbr.rel (!%p16_p4) target bundleno = 1 (0x1), region = 86 }

// kernel: custom-call.1
= control target key start
LH: loop header
LB: loop body
LE: loop exit
PB: predicated region body
PF: predicated region fallthrough
CT: control target
= control target key end

     0   :  { %s51_s0 = inlined_call_operand.hbm [shape: c64[2,4,16,16], index: 0, kind: input, shape index: {}]   ;;  %s52_s1 = inlined_call_operand.vmem [shape: f32[2,4,16,16], index: 1, kind: output, shape index: {}]  }
   0x1   :  { %s2_s8 = scalar_lea.hbm %s51_s0, 2048 }
   0x2   :  { %3 = vsyncpa [#allocation0], 0  ;;  %s4_s11 = sshll.u32 %s52_s1, 4  ;;  %s5_s11 = int_to_ptr.vmem [resolvable:$true] %s4_s11 }
   0x3   :  { %s20_s12 = scalar_lea.vmem %s5_s11, 2048  ;;  %p25_p1 = scmp.lt.s32.totalorder %s5_s11, %s5_s11 }
   0x4   :  { %p21_p0 = scmp.ne.s32.totalorder %s5_s11, %s20_s12  ;;  %p26_p2 = scmp.lt.s32.totalorder %s20_s12, %s20_s12 }
   0x6   :  { %p27_p3 = por %p26_p2, %p25_p1 }
   0x8   :  { %p28_p4 = pnand %p27_p3, %p21_p0 }
   0xa   :  { %31 = shalt.err (!%p28_p4)  }
   0xb   :  { %7 = dma.hbm_to_vmem [thread:$0]  %s2_s8, 2048, %s5_s11, [#allocation0] }
   0xc   :  { %33 = dma.done.wait [#allocation0], 2048  }
   0xd   :  { %34 = vsyncadd [#allocation0], 4294965248 }
   0xe   :  { %9 = vsyncpa [#allocation0], 1 }

// kernel: custom-call
= control target key start
LH: loop header
LB: loop body
LE: loop exit
PB: predicated region body
PF: predicated region fallthrough
CT: control target
= control target key end

     0   :  { %2 = vsyncpa [#allocation0], 0  ;;  %s47_s0 = inlined_call_operand.hbm [shape: c64[2,4,16,16], index: 0, kind: input, shape index: {}]   ;;  %s48_s1 = inlined_call_operand.vmem [shape: f32[2,4,16,16], index: 1, kind: output, shape index: {}]  }
   0x1   :  { %s3_s8 = sshll.u32 %s48_s1, 4  ;;  %s4_s8 = int_to_ptr.vmem [resolvable:$true] %s3_s8 }
   0x2   :  { %s17_s9 = scalar_lea.vmem %s4_s8, 2048  ;;  %p22_p1 = scmp.lt.s32.totalorder %s4_s8, %s4_s8 }
   0x3   :  { %p18_p0 = scmp.ne.s32.totalorder %s4_s8, %s17_s9  ;;  %p23_p2 = scmp.lt.s32.totalorder %s17_s9, %s17_s9 }
   0x5   :  { %p24_p3 = por %p23_p2, %p22_p1 }
   0x7   :  { %p25_p4 = pnand %p24_p3, %p18_p0 }
   0x9   :  { %28 = shalt.err (!%p25_p4)  }
   0xa   :  { %6 = dma.hbm_to_vmem [thread:$0]  %s47_s0, 2048, %s4_s8, [#allocation0] }
   0xb   :  { %29 = dma.done.wait [#allocation0], 2048  }
   0xc   :  { %30 = vsyncadd [#allocation0], 4294965248 }
   0xd   :  { %8 = vsyncpa [#allocation0], 1 }

// kernel: custom-call.2
= control target key start
LH: loop header
LB: loop body
LE: loop exit
PB: predicated region body
PF: predicated region fallthrough
CT: control target
= control target key end

     0   :  { %2 = vsyncpa [#allocation0], 0  ;;  %s47_s0 = inlined_call_operand.hbm [shape: c64[4,16,16], index: 0, kind: input, shape index: {}]   ;;  %s48_s1 = inlined_call_operand.vmem [shape: f32[4,16,16], index: 1, kind: output, shape index: {}]  }
   0x1   :  { %s3_s8 = sshll.u32 %s48_s1, 4  ;;  %s4_s8 = int_to_ptr.vmem [resolvable:$true] %s3_s8 }
   0x2   :  { %s17_s9 = scalar_lea.vmem %s4_s8, 1024  ;;  %p22_p1 = scmp.lt.s32.totalorder %s4_s8, %s4_s8 }
   0x3   :  { %p18_p0 = scmp.ne.s32.totalorder %s4_s8, %s17_s9  ;;  %p23_p2 = scmp.lt.s32.totalorder %s17_s9, %s17_s9 }
   0x5   :  { %p24_p3 = por %p23_p2, %p22_p1 }
   0x7   :  { %p25_p4 = pnand %p24_p3, %p18_p0 }
   0x9   :  { %28 = shalt.err (!%p25_p4)  }
   0xa   :  { %6 = dma.hbm_to_vmem [thread:$0]  %s47_s0, 1024, %s4_s8, [#allocation0] }
   0xb   :  { %29 = dma.done.wait [#allocation0], 1024  }
   0xc   :  { %30 = vsyncadd [#allocation0], 4294966272 }
   0xd   :  { %8 = vsyncpa [#allocation0], 1 }

// kernel: custom-call.3
= control target key start
LH: loop header
LB: loop body
LE: loop exit
PB: predicated region body
PF: predicated region fallthrough
CT: control target
= control target key end

     0   :  { %s51_s0 = inlined_call_operand.hbm [shape: c64[4,16,16], index: 0, kind: input, shape index: {}]   ;;  %s52_s1 = inlined_call_operand.vmem [shape: f32[4,16,16], index: 1, kind: output, shape index: {}]  }
   0x1   :  { %s2_s8 = scalar_lea.hbm %s51_s0, 1024 }
   0x2   :  { %3 = vsyncpa [#allocation0], 0  ;;  %s4_s11 = sshll.u32 %s52_s1, 4  ;;  %s5_s11 = int_to_ptr.vmem [resolvable:$true] %s4_s11 }
   0x3   :  { %s20_s12 = scalar_lea.vmem %s5_s11, 1024  ;;  %p25_p1 = scmp.lt.s32.totalorder %s5_s11, %s5_s11 }
   0x4   :  { %p21_p0 = scmp.ne.s32.totalorder %s5_s11, %s20_s12  ;;  %p26_p2 = scmp.lt.s32.totalorder %s20_s12, %s20_s12 }
   0x6   :  { %p27_p3 = por %p26_p2, %p25_p1 }
   0x8   :  { %p28_p4 = pnand %p27_p3, %p21_p0 }
   0xa   :  { %31 = shalt.err (!%p28_p4)  }
   0xb   :  { %7 = dma.hbm_to_vmem [thread:$0]  %s2_s8, 1024, %s5_s11, [#allocation0] }
   0xc   :  { %33 = dma.done.wait [#allocation0], 1024  }
   0xd   :  { %34 = vsyncadd [#allocation0], 4294966272 }
   0xe   :  { %9 = vsyncpa [#allocation0], 1 }

// kernel: neg.3
= control target key start
LH: loop header
LB: loop body
LE: loop exit
PB: predicated region body
PF: predicated region fallthrough
CT: control target
= control target key end

     0   :  { %s40_s0 = inlined_call_operand.vmem [shape: f32[16,64], index: 0, kind: input, shape index: {}]   ;;  %s41_s1 = inlined_call_operand.vmem [shape: f32[16,64], index: 1, kind: output, shape index: {}]  }
   0x1   :  { %v2_v0 = vld [vmem:[%s40_s0] sm:$0xff]  ;;  %v16_v1 = vld [vmem:[%s40_s0 + $0x8] sm:$0xff] }
   0x2   :  { %v5_v2 = vxor.u32 2147483648, %v2_v0  ;;  %v12_v3 = vxor.u32 2147483648, %v16_v1 }
   0x4   :  { %7 = vst [vmem:[%s41_s1] sm:$0xff] %v5_v2  ;;  %17 = vst [vmem:[%s41_s1 + $0x8] sm:$0xff] %v12_v3 }

// kernel: custom-call.6
= control target key start
LH: loop header
LB: loop body
LE: loop exit
PB: predicated region body
PF: predicated region fallthrough
CT: control target
= control target key end

     0   :  { %2 = vsyncpa [#allocation0], 0  ;;  %s47_s0 = inlined_call_operand.hbm [shape: c64[32,4,4,4], index: 0, kind: input, shape index: {}]   ;;  %s48_s1 = inlined_call_operand.vmem [shape: f32[32,4,4,4], index: 1, kind: output, shape index: {}]  }
   0x1   :  { %s3_s8 = sshll.u32 %s48_s1, 4  ;;  %s4_s8 = int_to_ptr.vmem [resolvable:$true] %s3_s8 }
   0x2   :  { %s17_s9 = scalar_lea.vmem %s4_s8, 1024  ;;  %p22_p1 = scmp.lt.s32.totalorder %s4_s8, %s4_s8 }
   0x3   :  { %p18_p0 = scmp.ne.s32.totalorder %s4_s8, %s17_s9  ;;  %p23_p2 = scmp.lt.s32.totalorder %s17_s9, %s17_s9 }
   0x5   :  { %p24_p3 = por %p23_p2, %p22_p1 }
   0x7   :  { %p25_p4 = pnand %p24_p3, %p18_p0 }
   0x9   :  { %28 = shalt.err (!%p25_p4)  }
   0xa   :  { %6 = dma.hbm_to_vmem [thread:$0]  %s47_s0, 1024, %s4_s8, [#allocation0] }
   0xb   :  { %29 = dma.done.wait [#allocation0], 1024  }
   0xc   :  { %30 = vsyncadd [#allocation0], 4294966272 }
   0xd   :  { %8 = vsyncpa [#allocation0], 1 }

// kernel: custom-call.7
= control target key start
LH: loop header
LB: loop body
LE: loop exit
PB: predicated region body
PF: predicated region fallthrough
CT: control target
= control target key end

     0   :  { %s51_s0 = inlined_call_operand.hbm [shape: c64[32,4,4,4], index: 0, kind: input, shape index: {}]   ;;  %s52_s1 = inlined_call_operand.vmem [shape: f32[32,4,4,4], index: 1, kind: output, shape index: {}]  }
   0x1   :  { %s2_s8 = scalar_lea.hbm %s51_s0, 1024 }
   0x2   :  { %3 = vsyncpa [#allocation0], 0  ;;  %s4_s11 = sshll.u32 %s52_s1, 4  ;;  %s5_s11 = int_to_ptr.vmem [resolvable:$true] %s4_s11 }
   0x3   :  { %s20_s12 = scalar_lea.vmem %s5_s11, 1024  ;;  %p25_p1 = scmp.lt.s32.totalorder %s5_s11, %s5_s11 }
   0x4   :  { %p21_p0 = scmp.ne.s32.totalorder %s5_s11, %s20_s12  ;;  %p26_p2 = scmp.lt.s32.totalorder %s20_s12, %s20_s12 }
   0x6   :  { %p27_p3 = por %p26_p2, %p25_p1 }
   0x8   :  { %p28_p4 = pnand %p27_p3, %p21_p0 }
   0xa   :  { %31 = shalt.err (!%p28_p4)  }
   0xb   :  { %7 = dma.hbm_to_vmem [thread:$0]  %s2_s8, 1024, %s5_s11, [#allocation0] }
   0xc   :  { %33 = dma.done.wait [#allocation0], 1024  }
   0xd   :  { %34 = vsyncadd [#allocation0], 4294966272 }
   0xe   :  { %9 = vsyncpa [#allocation0], 1 }

// kernel: custom-call.9
= control target key start
LH: loop header
LB: loop body
LE: loop exit
PB: predicated region body
PF: predicated region fallthrough
CT: control target
= control target key end

     0   :  { %s51_s0 = inlined_call_operand.hbm [shape: c64[32], index: 0, kind: input, shape index: {}]   ;;  %s52_s1 = inlined_call_operand.vmem [shape: f32[32], index: 1, kind: output, shape index: {}]  }
   0x1   :  { %s2_s8 = scalar_lea.hbm %s51_s0, 16 }
   0x2   :  { %3 = vsyncpa [#allocation0], 0  ;;  %s4_s11 = sshll.u32 %s52_s1, 4  ;;  %s5_s11 = int_to_ptr.vmem [resolvable:$true] %s4_s11 }
   0x3   :  { %s20_s12 = scalar_lea.vmem %s5_s11, 16  ;;  %p25_p1 = scmp.lt.s32.totalorder %s5_s11, %s5_s11 }
   0x4   :  { %p21_p0 = scmp.ne.s32.totalorder %s5_s11, %s20_s12  ;;  %p26_p2 = scmp.lt.s32.totalorder %s20_s12, %s20_s12 }
   0x6   :  { %p27_p3 = por %p26_p2, %p25_p1 }
   0x8   :  { %p28_p4 = pnand %p27_p3, %p21_p0 }
   0xa   :  { %31 = shalt.err (!%p28_p4)  }
   0xb   :  { %7 = dma.hbm_to_vmem [thread:$0]  %s2_s8, 16, %s5_s11, [#allocation0] }
   0xc   :  { %33 = dma.done.wait [#allocation0], 16  }
   0xd   :  { %34 = vsyncadd [#allocation0], 4294967280 }
   0xe   :  { %9 = vsyncpa [#allocation0], 1 }

// kernel: custom-call.8
= control target key start
LH: loop header
LB: loop body
LE: loop exit
PB: predicated region body
PF: predicated region fallthrough
CT: control target
= control target key end

     0   :  { %2 = vsyncpa [#allocation0], 0  ;;  %s47_s0 = inlined_call_operand.hbm [shape: c64[32], index: 0, kind: input, shape index: {}]   ;;  %s48_s1 = inlined_call_operand.vmem [shape: f32[32], index: 1, kind: output, shape index: {}]  }
   0x1   :  { %s3_s8 = sshll.u32 %s48_s1, 4  ;;  %s4_s8 = int_to_ptr.vmem [resolvable:$true] %s3_s8 }
   0x2   :  { %s17_s9 = scalar_lea.vmem %s4_s8, 16  ;;  %p22_p1 = scmp.lt.s32.totalorder %s4_s8, %s4_s8 }
   0x3   :  { %p18_p0 = scmp.ne.s32.totalorder %s4_s8, %s17_s9  ;;  %p23_p2 = scmp.lt.s32.totalorder %s17_s9, %s17_s9 }
   0x5   :  { %p24_p3 = por %p23_p2, %p22_p1 }
   0x7   :  { %p25_p4 = pnand %p24_p3, %p18_p0 }
   0x9   :  { %28 = shalt.err (!%p25_p4)  }
   0xa   :  { %6 = dma.hbm_to_vmem [thread:$0]  %s47_s0, 16, %s4_s8, [#allocation0] }
   0xb   :  { %29 = dma.done.wait [#allocation0], 16  }
   0xc   :  { %30 = vsyncadd [#allocation0], 4294967280 }
   0xd   :  { %8 = vsyncpa [#allocation0], 1 }

// kernel: custom-call.10
= control target key start
LH: loop header
LB: loop body
LE: loop exit
PB: predicated region body
PF: predicated region fallthrough
CT: control target
= control target key end

     0   :  { %2 = vsyncpa [#allocation0], 0  ;;  %s47_s0 = inlined_call_operand.hbm [shape: c64[32,4,4], index: 0, kind: input, shape index: {}]   ;;  %s48_s1 = inlined_call_operand.vmem [shape: f32[32,4,4], index: 1, kind: output, shape index: {}]  }
   0x1   :  { %s3_s8 = sshll.u32 %s48_s1, 4  ;;  %s4_s8 = int_to_ptr.vmem [resolvable:$true] %s3_s8 }
   0x2   :  { %s17_s9 = scalar_lea.vmem %s4_s8, 256  ;;  %p22_p1 = scmp.lt.s32.totalorder %s4_s8, %s4_s8 }
   0x3   :  { %p18_p0 = scmp.ne.s32.totalorder %s4_s8, %s17_s9  ;;  %p23_p2 = scmp.lt.s32.totalorder %s17_s9, %s17_s9 }
   0x5   :  { %p24_p3 = por %p23_p2, %p22_p1 }
   0x7   :  { %p25_p4 = pnand %p24_p3, %p18_p0 }
   0x9   :  { %28 = shalt.err (!%p25_p4)  }
   0xa   :  { %6 = dma.hbm_to_vmem [thread:$0]  %s47_s0, 256, %s4_s8, [#allocation0] }
   0xb   :  { %29 = dma.done.wait [#allocation0], 256  }
   0xc   :  { %30 = vsyncadd [#allocation0], 4294967040 }
   0xd   :  { %8 = vsyncpa [#allocation0], 1 }

// kernel: custom-call.11
= control target key start
LH: loop header
LB: loop body
LE: loop exit
PB: predicated region body
PF: predicated region fallthrough
CT: control target
= control target key end

     0   :  { %s51_s0 = inlined_call_operand.hbm [shape: c64[32,4,4], index: 0, kind: input, shape index: {}]   ;;  %s52_s1 = inlined_call_operand.vmem [shape: f32[32,4,4], index: 1, kind: output, shape index: {}]  }
   0x1   :  { %s2_s8 = scalar_lea.hbm %s51_s0, 256 }
   0x2   :  { %3 = vsyncpa [#allocation0], 0  ;;  %s4_s11 = sshll.u32 %s52_s1, 4  ;;  %s5_s11 = int_to_ptr.vmem [resolvable:$true] %s4_s11 }
   0x3   :  { %s20_s12 = scalar_lea.vmem %s5_s11, 256  ;;  %p25_p1 = scmp.lt.s32.totalorder %s5_s11, %s5_s11 }
   0x4   :  { %p21_p0 = scmp.ne.s32.totalorder %s5_s11, %s20_s12  ;;  %p26_p2 = scmp.lt.s32.totalorder %s20_s12, %s20_s12 }
   0x6   :  { %p27_p3 = por %p26_p2, %p25_p1 }
   0x8   :  { %p28_p4 = pnand %p27_p3, %p21_p0 }
   0xa   :  { %31 = shalt.err (!%p28_p4)  }
   0xb   :  { %7 = dma.hbm_to_vmem [thread:$0]  %s2_s8, 256, %s5_s11, [#allocation0] }
   0xc   :  { %33 = dma.done.wait [#allocation0], 256  }
   0xd   :  { %34 = vsyncadd [#allocation0], 4294967040 }
   0xe   :  { %9 = vsyncpa [#allocation0], 1 }

// kernel: neg.5
= control target key start
LH: loop header
LB: loop body
LE: loop exit
PB: predicated region body
PF: predicated region fallthrough
CT: control target
= control target key end

     0   :  { %s40_s0 = inlined_call_operand.vmem [shape: f32[16,32], index: 0, kind: input, shape index: {}]   ;;  %s41_s1 = inlined_call_operand.vmem [shape: f32[16,32], index: 1, kind: output, shape index: {}]  }
   0x1   :  { %v2_v0 = vld [vmem:[%s40_s0] sm:$0xff]  ;;  %v16_v1 = vld [vmem:[%s40_s0 + $0x8] sm:$0xff] }
   0x2   :  { %v5_v2 = vxor.u32 2147483648, %v2_v0  ;;  %v12_v3 = vxor.u32 2147483648, %v16_v1 }
   0x4   :  { %7 = vst [vmem:[%s41_s1] sm:$0xff] %v5_v2  ;;  %17 = vst [vmem:[%s41_s1 + $0x8] sm:$0xff] %v12_v3 }

// kernel: custom-call.13
= control target key start
LH: loop header
LB: loop body
LE: loop exit
PB: predicated region body
PF: predicated region fallthrough
CT: control target
= control target key end

     0   :  { %s217_s0 = inlined_call_operand.vmem [shape: c64[32,4,4], index: 0, kind: input, shape index: {}]   ;;  %s218_s1 = inlined_call_operand.vmem [shape: f32[32,4,4], index: 1, kind: output, shape index: {}]  }
   0x1   :  { %v80_v0 = vld [vmem:[%s217_s0 + $0x80] sm:$0xff]  ;;  %v81_v1 = vld [vmem:[%s217_s0 + $0x88] sm:$0xff]  ;;  %v83_v2 = vld [vmem:[%s217_s0 + $0x90] sm:$0xff] }
   0x2   :  { %4 = vst [vmem:[%s218_s1] sm:$0xff] %v80_v0  ;;  %82 = vst [vmem:[%s218_s1 + $0x8] sm:$0xff] %v81_v1  ;;  %v85_v3 = vld [vmem:[%s217_s0 + $0x98] sm:$0xff]  ;;  %v87_v4 = vld [vmem:[%s217_s0 + $0xa0] sm:$0xff] }
   0x3   :  { %84 = vst [vmem:[%s218_s1 + $0x10] sm:$0xff] %v83_v2  ;;  %v89_v5 = vld [vmem:[%s217_s0 + $0xa8] sm:$0xff]  ;;  %86 = vst [vmem:[%s218_s1 + $0x18] sm:$0xff] %v85_v3  ;;  %v91_v6 = vld [vmem:[%s217_s0 + $0xb0] sm:$0xff] }
   0x4   :  { %88 = vst [vmem:[%s218_s1 + $0x20] sm:$0xff] %v87_v4  ;;  %90 = vst [vmem:[%s218_s1 + $0x28] sm:$0xff] %v89_v5  ;;  %v93_v7 = vld [vmem:[%s217_s0 + $0xb8] sm:$0xff]  ;;  %v95_v8 = vld [vmem:[%s217_s0 + $0xc0] sm:$0xff] }
   0x5   :  { %92 = vst [vmem:[%s218_s1 + $0x30] sm:$0xff] %v91_v6  ;;  %94 = vst [vmem:[%s218_s1 + $0x38] sm:$0xff] %v93_v7  ;;  %v97_v9 = vld [vmem:[%s217_s0 + $0xc8] sm:$0xff]  ;;  %v99_v10 = vld [vmem:[%s217_s0 + $0xd0] sm:$0xff] }
   0x6   :  { %96 = vst [vmem:[%s218_s1 + $0x40] sm:$0xff] %v95_v8  ;;  %v101_v11 = vld [vmem:[%s217_s0 + $0xd8] sm:$0xff]  ;;  %98 = vst [vmem:[%s218_s1 + $0x48] sm:$0xff] %v97_v9  ;;  %v103_v12 = vld [vmem:[%s217_s0 + $0xe0] sm:$0xff] }
   0x7   :  { %100 = vst [vmem:[%s218_s1 + $0x50] sm:$0xff] %v99_v10  ;;  %102 = vst [vmem:[%s218_s1 + $0x58] sm:$0xff] %v101_v11  ;;  %v105_v13 = vld [vmem:[%s217_s0 + $0xe8] sm:$0xff]  ;;  %v107_v14 = vld [vmem:[%s217_s0 + $0xf0] sm:$0xff] }
   0x8   :  { %104 = vst [vmem:[%s218_s1 + $0x60] sm:$0xff] %v103_v12  ;;  %106 = vst [vmem:[%s218_s1 + $0x68] sm:$0xff] %v105_v13  ;;  %v109_v15 = vld [vmem:[%s217_s0 + $0xf8] sm:$0xff] }
   0x9   :  { %108 = vst [vmem:[%s218_s1 + $0x70] sm:$0xff] %v107_v14  ;;  %110 = vst [vmem:[%s218_s1 + $0x78] sm:$0xff] %v109_v15 }

// kernel: custom-call.12
= control target key start
LH: loop header
LB: loop body
LE: loop exit
PB: predicated region body
PF: predicated region fallthrough
CT: control target
= control target key end

     0   :  { %s200_s0 = inlined_call_operand.vmem [shape: c64[32,4,4], index: 0, kind: input, shape index: {}]   ;;  %s201_s1 = inlined_call_operand.vmem [shape: f32[32,4,4], index: 1, kind: output, shape index: {}]  }
   0x1   :  { %v2_v0 = vld [vmem:[%s200_s0] sm:$0xff]  ;;  %v64_v1 = vld [vmem:[%s200_s0 + $0x8] sm:$0xff]  ;;  %v66_v2 = vld [vmem:[%s200_s0 + $0x10] sm:$0xff] }
   0x2   :  { %3 = vst [vmem:[%s201_s1] sm:$0xff] %v2_v0  ;;  %65 = vst [vmem:[%s201_s1 + $0x8] sm:$0xff] %v64_v1  ;;  %v68_v3 = vld [vmem:[%s200_s0 + $0x18] sm:$0xff]  ;;  %v70_v4 = vld [vmem:[%s200_s0 + $0x20] sm:$0xff] }
   0x3   :  { %67 = vst [vmem:[%s201_s1 + $0x10] sm:$0xff] %v66_v2  ;;  %v72_v5 = vld [vmem:[%s200_s0 + $0x28] sm:$0xff]  ;;  %69 = vst [vmem:[%s201_s1 + $0x18] sm:$0xff] %v68_v3  ;;  %v74_v6 = vld [vmem:[%s200_s0 + $0x30] sm:$0xff] }
   0x4   :  { %71 = vst [vmem:[%s201_s1 + $0x20] sm:$0xff] %v70_v4  ;;  %73 = vst [vmem:[%s201_s1 + $0x28] sm:$0xff] %v72_v5  ;;  %v76_v7 = vld [vmem:[%s200_s0 + $0x38] sm:$0xff]  ;;  %v78_v8 = vld [vmem:[%s200_s0 + $0x40] sm:$0xff] }
   0x5   :  { %75 = vst [vmem:[%s201_s1 + $0x30] sm:$0xff] %v74_v6  ;;  %77 = vst [vmem:[%s201_s1 + $0x38] sm:$0xff] %v76_v7  ;;  %v80_v9 = vld [vmem:[%s200_s0 + $0x48] sm:$0xff]  ;;  %v82_v10 = vld [vmem:[%s200_s0 + $0x50] sm:$0xff] }
   0x6   :  { %79 = vst [vmem:[%s201_s1 + $0x40] sm:$0xff] %v78_v8  ;;  %v84_v11 = vld [vmem:[%s200_s0 + $0x58] sm:$0xff]  ;;  %81 = vst [vmem:[%s201_s1 + $0x48] sm:$0xff] %v80_v9  ;;  %v86_v12 = vld [vmem:[%s200_s0 + $0x60] sm:$0xff] }
   0x7   :  { %83 = vst [vmem:[%s201_s1 + $0x50] sm:$0xff] %v82_v10  ;;  %85 = vst [vmem:[%s201_s1 + $0x58] sm:$0xff] %v84_v11  ;;  %v88_v13 = vld [vmem:[%s200_s0 + $0x68] sm:$0xff]  ;;  %v90_v14 = vld [vmem:[%s200_s0 + $0x70] sm:$0xff] }
   0x8   :  { %87 = vst [vmem:[%s201_s1 + $0x60] sm:$0xff] %v86_v12  ;;  %89 = vst [vmem:[%s201_s1 + $0x68] sm:$0xff] %v88_v13  ;;  %v92_v15 = vld [vmem:[%s200_s0 + $0x78] sm:$0xff] }
   0x9   :  { %91 = vst [vmem:[%s201_s1 + $0x70] sm:$0xff] %v90_v14  ;;  %93 = vst [vmem:[%s201_s1 + $0x78] sm:$0xff] %v92_v15 }

// kernel: custom-call.14
= control target key start
LH: loop header
LB: loop body
LE: loop exit
PB: predicated region body
PF: predicated region fallthrough
CT: control target
= control target key end

     0   :  { %s92_s0 = inlined_call_operand.vmem [shape: f32[2,32,4,4], index: 0, kind: input, shape index: {}]   ;;  %s93_s1 = inlined_call_operand.vmem [shape: f32[2,32,4,4], index: 1, kind: input, shape index: {}]   ;;  %s94_s2 = inlined_call_operand.hbm [shape: c64[2,32,4,4], index: 2, kind: output, shape index: {}]  }
   0x1   :  { %s3_s11 = scalar_lea.hbm %s94_s2, 512 }
   0x2   :  { %4 = vsyncpa [#allocation0], 0  ;;  %s5_s14 = sshll.u32 %s92_s0, 4  ;;  %s6_s14 = int_to_ptr.vmem [resolvable:$true] %s5_s14 }
   0x3   :  { %s18_s15 = scalar_lea.vmem %s6_s14, 512  ;;  %p23_p1 = scmp.lt.s32.totalorder %s6_s14, %s6_s14 }
   0x4   :  { %p19_p0 = scmp.ne.s32.totalorder %s6_s14, %s18_s15  ;;  %p24_p2 = scmp.lt.s32.totalorder %s18_s15, %s18_s15 }
   0x6   :  { %p25_p3 = por %p24_p2, %p23_p1 }
   0x8   :  { %p26_p4 = pnand %p25_p3, %p19_p0 }
   0xa   :  { %29 = shalt.err (!%p26_p4)  }
   0xb   :  { %8 = dma.vmem_to_hbm [thread:$0]  %s6_s14, 512, %s94_s2, [#allocation0] }
   0xc   :  { %61 = dma.done.wait [#allocation0], 512  }
   0xd   :  { %62 = vsyncadd [#allocation0], 4294966784 }
   0xe   :  { %10 = vsyncpa [#allocation0], 1 }
   0xf   :  { %11 = vsyncpa [#allocation1], 0  ;;  %s12_s0 = sshll.u32 %s93_s1, 4  ;;  %s13_s0 = int_to_ptr.vmem [resolvable:$true] %s12_s0 }
  0x10   :  { %s38_s20 = scalar_lea.vmem %s13_s0, 512  ;;  %p43_p6 = scmp.lt.s32.totalorder %s13_s0, %s13_s0 }
  0x11   :  { %p39_p5 = scmp.ne.s32.totalorder %s13_s0, %s38_s20  ;;  %p44_p7 = scmp.lt.s32.totalorder %s38_s20, %s38_s20 }
  0x13   :  { %p45_p8 = por %p44_p7, %p43_p6 }
  0x15   :  { %p46_p9 = pnand %p45_p8, %p39_p5 }
  0x17   :  { %49 = shalt.err (!%p46_p9)  }
  0x18   :  { %15 = dma.vmem_to_hbm [thread:$0]  %s13_s0, 512, %s3_s11, [#allocation1] }
  0x19   :  { %63 = dma.done.wait [#allocation1], 512  }
  0x1a   :  { %64 = vsyncadd [#allocation1], 4294966784 }
  0x1b   :  { %17 = vsyncpa [#allocation1], 1 }

// kernel: patch_embedder_forward.1
= control target key start
LH: loop header
LB: loop body
LE: loop exit
PB: predicated region body
PF: predicated region fallthrough
CT: control target
= control target key end

     0   :  { %s839_s30 = smov 0   ;;  %s951_s0 = inlined_call_operand.vmem [shape: f32[2,16,128], index: 0, kind: input, shape index: {}]   ;;  %s952_s1 = inlined_call_operand.vmem [shape: f32[16,128], index: 1, kind: input, shape index: {}]   ;;  %s953_s2 = inlined_call_operand.vmem [shape: f32[16,128], index: 2, kind: input, shape index: {}]   ;;  %s954_s3 = inlined_call_operand.vmem [shape: f32[16,128], index: 3, kind: input, shape index: {}]   ;;  %s955_s4 = inlined_call_operand.vmem [shape: bf16[128,64], index: 4, kind: input, shape index: {}]   ;;  %s956_s5 = inlined_call_operand.vmem [shape: f32[1,64], index: 5, kind: input, shape index: {}]   ;;  %s957_s6 = inlined_call_operand.vmem [shape: f32[16,64], index: 6, kind: input, shape index: {}]   ;;  %s958_s7 = inlined_call_operand.vmem [shape: f32[16,64], index: 7, kind: input, shape index: {}]   ;;  %s959_s8 = inlined_call_operand.vmem [shape: f32[16,64], index: 8, kind: input, shape index: {}]   ;;  %s960_s9 = inlined_call_operand.vmem [shape: f32[2,64,16], index: 9, kind: output, shape index: {}]  }
   0x1 LB: > { %s696_s10 = sadd.s32 4294967295, %s782_s30   ;;  %p700_p0 = scmp.ge.s32.totalorder %s782_s30, 1  ;;  %s782_s30 = sphi %s839_s30, %s19_s30  }
   0x2   : > { %p287_p1 = scmp.lt.s32.totalorder %s782_s30, 3 }
   0x4   : > { %p288_p2 = pnand %p700_p0, %p287_p1 }
   0x5   : > { %p323_p3 = scmp.lt.s32.totalorder (!%p288_p2), %s696_s10, 1  ;;  %s784_s15 = smov (!%p288_p2), 64  }
   0x6   : > { %291 = sbr.rel (%p288_p2) target bundleno = 1849 (0x739), region = 56  ;;  %s787_s29 = smov (!%p288_p2), 96  }
   0xb   : > { %s962_s10 = smov (!%p323_p3, %s696_s10), 1  ;;  %vm343_vm0 = vcmask 523264   ;;  %v356_v12 = vlaneseq  ;;  %v764_v24 = vld [vmem:[%s955_s4 + $0x38] sm:$0xff]   ;;  %v785_v25 = vmov 0.0   ;;  %v765_v26 = vld [vmem:[%s955_s4 + $0x30] sm:$0xff]   ;;  %v766_v27 = vld [vmem:[%s955_s4 + $0x28] sm:$0xff]  }
   0xc   : > { %s716_s11 = sshll.u32 %s962_s10, 4  ;;  %727 = vmatprep.subr.bf16.mxu0 %v785_v25  ;;  %v767_v28 = vld [vmem:[%s955_s4 + $0x20] sm:$0xff]   ;;  %v768_v29 = vld [vmem:[%s955_s4 + $0x18] sm:$0xff]   ;;  %v769_v40 = vld [vmem:[%s955_s4 + $0x10] sm:$0xff]   ;;  %vm786_vm2 = vmmov 0   ;;  %vm520_vm3 = vcmask 261120  }
   0xd   : > { %s327_s14 = scalar_lea.vmem %s951_s0, %s716_s11  ;;  %v856_v13 = vand.u32 127, %v356_v12  ;;  %728 = vmatpush3.bf16.msra.mxu0 %v764_v24  ;;  %v770_v41 = vld [vmem:[%s955_s4 + $0x8] sm:$0xff]   ;;  %v771_v42 = vld [vmem:[%s955_s4] sm:$0xff]   ;;  %743 = vmatprep.mubr.msk.bf16.mxu0 %vm786_vm2, %v785_v25  ;;  %vm561_vm5 = vcmask 1048064   ;;  %s717_s25 = sshll.u32 %s962_s10, 6  ;;  %vm632_vm6 = vcmask 130048  }
   0xe   : > { %v334_v0 = vld [vmem:[%s327_s14] sm:$0xff]  ;;  %v335_v1 = vld [vmem:[%s327_s14 + $0x8] sm:$0xff]  ;;  %729 = vmatprep.subr.bf16.mxu0 %v785_v25  ;;  %s788_s14 = smov 32   ;;  %s332_s28 = scalar_lea.vmem %s960_s9, %s717_s25 }
   0xf   : > { %v336_v2 = vadd.f32 %v335_v1, %v334_v0  ;;  %vm358_vm1 = vcmp.lt.s32.totalorder %v856_v13, 64  ;;  %v388_v46 = vld [vmem:[%s953_s2] sm:$0xff]  ;;  %v381_v50 = vld [vmem:[%s952_s1 + $0x8] sm:$0xff]  ;;  %vm533_vm4 = vcmp.lt.s32.totalorder %v856_v13, 32 }
  0x10   : > { %v380_v47 = vld [vmem:[%s952_s1] sm:$0xff]  ;;  %v389_v51 = vld [vmem:[%s953_s2 + $0x8] sm:$0xff] }
  0x11   : > { %v337_v3 = vrot.slane %v336_v2, 4  ;;  %730 = vmatpush3.bf16.msra.mxu0 %v765_v26  ;;  %v394_v57 = vld [vmem:[%s954_s3] sm:$0xff]  ;;  %v395_v58 = vld [vmem:[%s954_s3 + $0x8] sm:$0xff] }
  0x12   : > { %731 = vmatprep.subr.bf16.mxu0 %v785_v25  ;;  %v705_v63 = vld [vmem:[%s956_s5] ss:$0 sm:$0xff] }
  0x13   : > { %v338_v4 = vadd.f32 %v337_v3, %v336_v2 }
  0x15   : > { %v339_v5 = vrot.slane %v338_v4, 2  ;;  %732 = vmatpush3.bf16.msra.mxu0 %v766_v27 }
  0x16   : > { %733 = vmatprep.subr.bf16.mxu0 %v785_v25 }
  0x17   : > { %v340_v6 = vadd.f32 %v339_v5, %v338_v4 }
  0x19   : > { %v341_v7 = vrot.slane %v340_v6, 1  ;;  %734 = vmatpush3.bf16.msra.mxu0 %v767_v28 }
  0x1a   : > { %735 = vmatprep.subr.bf16.mxu0 %v785_v25 }
  0x1b   : > { %v342_v8 = vadd.f32 %v341_v7, %v340_v6 }
  0x1d   : > { %349 = vrot.lane.b32.xlu0 %v342_v8, %s784_s15  ;;  %v344_v9 = vsel %vm343_vm0, %v342_v8, 0.0  ;;  %736 = vmatpush3.bf16.msra.mxu0 %v768_v29 }
  0x1e   : > { %737 = vmatprep.subr.bf16.mxu0 %v785_v25 }
  0x21   : > { %738 = vmatpush3.bf16.msra.mxu0 %v769_v40  ;;  %v574_v40 = vld [vmem:[%s958_s7] sm:$0xff] }
  0x22   : > { %739 = vmatprep.subr.bf16.mxu0 %v785_v25 }
  0x25   : > { %740 = vmatpush3.bf16.msra.mxu0 %v770_v41 }
  0x26   : > { %741 = vmatprep.subr.bf16.mxu0 %v785_v25 }
  0x29   : > { %742 = vmatpush3.bf16.msra.mxu0 %v771_v42 }
  0x3c   : > { %345 = vadd.xlane.f32.xlu0 %v344_v9 }
  0x8f   : > { %v350_v10 = vpop.permute.xlu0 %349 }
  0x90   : > { %v352_v11 = vsel %vm343_vm0, %v350_v10, 0.0 }
  0x91   : > { %353 = vadd.xlane.f32.xlu1 %v352_v11 }
  0xc5   : > { %v346_v14 = vpop.xlane.xlu0 %345 }
  0xc6   : > { %v347_v15 = vmul.f32 0.0009765625, %v346_v14 }
 0x11a   : > { %v354_v16 = vpop.xlane.xlu1 %353 }
 0x11b   : > { %v355_v17 = vmul.f32 0.0009765625, %v354_v16 }
 0x11d   : > { %v359_v18 = vsel %vm358_vm1, %v347_v15, %v355_v17 }
 0x11e   : > { %v360_v19 = vsub.f32 %v334_v0, %v359_v18  ;;  %v361_v20 = vsub.f32 %v335_v1, %v359_v18 }
 0x120   : > { %v362_v21 = vmul.f32 %v360_v19, %v360_v19  ;;  %v363_v22 = vmul.f32 %v361_v20, %v361_v20 }
 0x122   : > { %v364_v23 = vadd.f32 %v363_v22, %v362_v21 }
 0x124   : > { %365 = vadd.xlane.f32.xlu1 %v364_v23 }
 0x1ad   : > { %v366_v30 = vpop.xlane.xlu1 %365 }
 0x1ae   : > { %v367_v31 = vrot.slane %v366_v30, 4 }
 0x1b0   : > { %v368_v32 = vadd.f32 %v367_v31, %v366_v30 }
 0x1b2   : > { %v369_v33 = vrot.slane %v368_v32, 2 }
 0x1b4   : > { %v370_v34 = vadd.f32 %v369_v33, %v368_v32 }
 0x1b6   : > { %v371_v35 = vrot.slane %v370_v34, 1 }
 0x1b8   : > { %v372_v36 = vadd.f32 %v371_v35, %v370_v34 }
 0x1ba   : > { %747 = vpush %v372_v36 }
 0x1eb   : > { %s748_s26 = spop %747 }
 0x1ec   : > { %v374_v37 = vstv %s748_s26 }
 0x1ed   : > { %v375_v38 = vmul.f32 0.0009765625, %v374_v37 }
 0x1ef   : > { %v376_v39 = vadd.f32 1e-05, %v375_v38 }
 0x1f1   : > { %772 = vrsqrt.f32 %v376_v39 }
 0x1fe   : > { %v773_v43 = vpop.eup %772 }
 0x1ff   : > { %v378_v44 = vmul.f32 %v773_v43, %v360_v19  ;;  %v379_v45 = vmul.f32 %v773_v43, %v361_v20 }
 0x201   : > { %384 = vrot.lane.b32.xlu1 %v378_v44, %s784_s15  ;;  %v382_v52 = vmul.f32 %v380_v47, %v378_v44  ;;  %v383_v55 = vmul.f32 %v381_v50, %v379_v45 }
 0x205   : > { %386 = vrot.lane.b32.xlu1 %v379_v45, %s784_s15 }
 0x273   : > { %v385_v48 = vpop.permute.xlu1 %384 }
 0x274   : > { %v390_v49 = vmul.f32 %v388_v46, %v385_v48  ;;  %v575_v48 = vld [vmem:[%s958_s7 + $0x8] sm:$0xff] }
 0x276   : > { %v392_v54 = vadd.f32 %v390_v49, %v382_v52 }
 0x277   : > { %v387_v53 = vpop.permute.xlu1 %386 }
 0x278   : > { %v391_v56 = vmul.f32 %v389_v51, %v387_v53  ;;  %v396_v60 = vadd.f32 %v394_v57, %v392_v54  ;;  %v557_v57 = vld [vmem:[%s957_s6] sm:$0xff] }
 0x27a   : > { %v393_v59 = vadd.f32 %v391_v56, %v383_v55 }
 0x27c   : > { %v397_v61 = vadd.f32 %v395_v58, %v393_v59 }
 0x27e   : > { %v398_v62 = vpack.c.bf16 %v397_v61, %v396_v60  ;;  %v596_v60 = vld [vmem:[%s959_s8] sm:$0xff] }
 0x280   : > { %744 = vmatmul.mubr.bf16.vlgmr.msra.gmra.mxu0 %v398_v62 }
 0x340   : > { %v504_v0 = vpop.f32.mrf.mxu0 }
 0x341   : > { %v505_v2 = vadd.f32 %v705_v63, %v504_v0 }
 0x342   : > { %v745_v1 = vpop.f32.mrf.mxu0 }
 0x343   : > { %v511_v6 = vsel %vm343_vm0, %v505_v2, 0.0  ;;  %v597_v1 = vld [vmem:[%s959_s8 + $0x8] sm:$0xff] }
 0x344   : > { %v507_v3 = vpop.f32.mrf.mxu0 }
 0x345   : > { %v508_v4 = vadd.f32 %v705_v63, %v507_v3  ;;  %v558_v63 = vld [vmem:[%s957_s6 + $0x8] sm:$0xff] }
 0x346   : > { %v746_v5 = vpop.f32.mrf.mxu0 }
 0x347   : > { %v512_v7 = vsel %vm343_vm0, %v508_v4, 0.0 }
 0x348   : > { %v513_v8 = vadd.f32 %v512_v7, %v511_v6 }
 0x34a   : > { %v514_v9 = vrot.slane %v513_v8, 4 }
 0x34c   : > { %v515_v10 = vadd.f32 %v514_v9, %v513_v8 }
 0x34e   : > { %v516_v11 = vrot.slane %v515_v10, 2 }
 0x350   : > { %v517_v12 = vadd.f32 %v516_v11, %v515_v10 }
 0x352   : > { %v518_v14 = vrot.slane %v517_v12, 1 }
 0x354   : > { %v519_v15 = vadd.f32 %v518_v14, %v517_v12 }
 0x356   : > { %526 = vrot.lane.b32.xlu1 %v519_v15, %s787_s29  ;;  %v521_v16 = vsel %vm520_vm3, %v519_v15, 0.0 }
 0x37a   : > { %522 = vadd.xlane.f32.xlu1 %v521_v16 }
 0x38b   : > { %578 = vrot.lane.b32.xlu1 %v574_v40, %s788_s14 }
 0x3c8   : > { %v527_v17 = vpop.permute.xlu1 %526 }
 0x3c9   : > { %v529_v18 = vsel %vm520_vm3, %v527_v17, 0.0 }
 0x3ca   : > { %530 = vadd.xlane.f32.xlu0 %v529_v18 }
 0x403   : > { %v523_v19 = vpop.xlane.xlu1 %522 }
 0x404   : > { %v524_v21 = vmul.f32 0.001953125, %v523_v19 }
 0x407   : > { %v579_v49 = vpop.permute.xlu1 %578 }
 0x453   : > { %v531_v20 = vpop.xlane.xlu0 %530 }
 0x454   : > { %v532_v22 = vmul.f32 0.001953125, %v531_v20 }
 0x456   : > { %v534_v23 = vsel %vm533_vm4, %v524_v21, %v532_v22 }
 0x457   : > { %v535_v24 = vsub.f32 %v505_v2, %v534_v23  ;;  %v536_v25 = vsub.f32 %v508_v4, %v534_v23 }
 0x459   : > { %v537_v26 = vmul.f32 %v535_v24, %v535_v24  ;;  %v538_v27 = vmul.f32 %v536_v25, %v536_v25 }
 0x45b   : > { %v539_v28 = vsel %vm343_vm0, %v537_v26, 0.0  ;;  %v540_v29 = vsel %vm343_vm0, %v538_v27, 0.0 }
 0x45c   : > { %v541_v30 = vadd.f32 %v540_v29, %v539_v28 }
 0x45e   : > { %542 = vadd.xlane.f32.xlu0 %v541_v30 }
 0x4e7   : > { %v543_v31 = vpop.xlane.xlu0 %542 }
 0x4e8   : > { %v544_v32 = vrot.slane %v543_v31, 4 }
 0x4ea   : > { %v545_v33 = vadd.f32 %v544_v32, %v543_v31 }
 0x4ec   : > { %v546_v34 = vrot.slane %v545_v33, 2 }
 0x4ee   : > { %v547_v35 = vadd.f32 %v546_v34, %v545_v33 }
 0x4f0   : > { %v548_v13 = vrot.slane %v547_v35, 1 }
 0x4f2   : > { %v549_v36 = vadd.f32 %v548_v13, %v547_v35 }
 0x4f4   : > { %749 = vpush %v549_v36 }
 0x525   : > { %s750_s11 = spop %749 }
 0x526   : > { %v551_v37 = vstv %s750_s11 }
 0x527   : > { %v552_v38 = vmul.f32 0.001953125, %v551_v37 }
 0x529   : > { %v553_v39 = vadd.f32 1e-05, %v552_v38 }
 0x52b   : > { %774 = vrsqrt.f32 %v553_v39 }
 0x538   : > { %v775_v41 = vpop.eup %774 }
 0x539   : > { %v555_v42 = vmul.f32 %v775_v41, %v535_v24  ;;  %v556_v43 = vmul.f32 %v775_v41, %v536_v25 }
 0x53b   : > { %562 = vrot.lane.b32.xlu0 %v555_v42, %s784_s15  ;;  %v559_v58 = vmul.f32 %v557_v57, %v555_v42  ;;  %v560_v0 = vmul.f32 %v558_v63, %v556_v43 }
 0x53f   : > { %565 = vrot.lane.b32.xlu0 %v556_v43, %s784_s15 }
 0x5ad   : > { %v563_v44 = vpop.permute.xlu0 %562 }
 0x5ae   : > { %v564_v45 = vsel %vm561_vm5, %v563_v44, %v555_v42 }
 0x5af   : > { %568 = vrot.lane.b32.xlu0 %v564_v45, %s784_s15 }
 0x5b1   : > { %v566_v46 = vpop.permute.xlu0 %565 }
 0x5b2   : > { %v567_v47 = vsel %vm561_vm5, %v566_v46, %v556_v43 }
 0x5b3   : > { %570 = vrot.lane.b32.xlu0 %v567_v47, %s784_s15 }
 0x5b7   : > { %580 = vrot.lane.b32.xlu0 %v575_v48, %s788_s14 }
 0x621   : > { %v569_v50 = vpop.permute.xlu0 %568 }
 0x622   : > { %v572_v51 = vsel %vm561_vm5, %v569_v50, %v555_v42 }
 0x623   : > { %v584_v52 = vmul.f32 %v579_v49, %v572_v51 }
 0x625   : > { %v571_v53 = vpop.permute.xlu0 %570  ;;  %588 = vrot.lane.b32.xlu0 %v584_v52, %s787_s29 }
 0x626   : > { %v573_v54 = vsel %vm561_vm5, %v571_v53, %v556_v43 }
 0x629   : > { %v581_v55 = vpop.permute.xlu0 %580 }
 0x62a   : > { %v585_v56 = vmul.f32 %v581_v55, %v573_v54 }
 0x62c   : > { %590 = vrot.lane.b32.xlu0 %v585_v56, %s787_s29 }
 0x697   : > { %v589_v59 = vpop.permute.xlu0 %588 }
 0x698   : > { %v594_v61 = vadd.f32 %v589_v59, %v559_v58 }
 0x69a   : > { %v598_v62 = vadd.f32 %v596_v60, %v594_v61 }
 0x69c   : > { %600 = vxpose.xlu1.b32.start [1/2] (short) (narrow) %v598_v62, 64 }
 0x69e   : > { %v591_v2 = vpop.permute.xlu0 %590 }
 0x69f   : > { %v595_v3 = vadd.f32 %v591_v2, %v560_v0 }
 0x6a1   : > { %v599_v4 = vadd.f32 %v597_v1, %v595_v3 }
 0x6a3   : > { %601 = vxpose.xlu1.b32.end [2/2] (short) (narrow) %v599_v4, 64 }
 0x71b   : > { %v616_v5 = vpop.trf.xlu1 }
 0x71c   : > { %633 = vst.msk [vmem:[%s332_s28] sm:$0xff] %vm632_vm6, %v616_v5 }
 0x71f   : > { %v617_v6 = vpop.trf.xlu1 }
 0x720   : > { %634 = vst.msk [vmem:[%s332_s28 + $0x8] sm:$0xff] %vm632_vm6, %v617_v6 }
 0x723   : > { %v618_v7 = vpop.trf.xlu1 }
 0x724   : > { %635 = vst.msk [vmem:[%s332_s28 + $0x10] sm:$0xff] %vm632_vm6, %v618_v7 }
 0x727   : > { %v619_v8 = vpop.trf.xlu1 }
 0x728   : > { %636 = vst.msk [vmem:[%s332_s28 + $0x18] sm:$0xff] %vm632_vm6, %v619_v8 }
 0x72b   : > { %v620_v9 = vpop.trf.xlu1 }
 0x72c   : > { %637 = vst.msk [vmem:[%s332_s28 + $0x20] sm:$0xff] %vm632_vm6, %v620_v9 }
 0x72f   : > { %v621_v10 = vpop.trf.xlu1 }
 0x730   : > { %638 = vst.msk [vmem:[%s332_s28 + $0x28] sm:$0xff] %vm632_vm6, %v621_v10 }
 0x733   : > { %v622_v11 = vpop.trf.xlu1 }
 0x734   : > { %639 = vst.msk [vmem:[%s332_s28 + $0x30] sm:$0xff] %vm632_vm6, %v622_v11 }
 0x737   : > { %v623_v12 = vpop.trf.xlu1 }
 0x738   : > { %640 = vst.msk [vmem:[%s332_s28 + $0x38] sm:$0xff] %vm632_vm6, %v623_v12 }
 0x739 PF: > { %s19_s30 = sadd.s32 1, %s782_s30  }
 0x73a   : > { %p16_p4 = scmp.ge.s32.totalorder %s19_s30, 4  }
 0x73c   :  { %18 = sbr.rel (!%p16_p4) target bundleno = 1 (0x1), region = 86 }

</bundles_post_ra>
